<compile_context>
chip_gen: v5e
topology: v5e:2x2
jax: 0.10.0
libtpu: 0.0.40
codegen_flags: <defaults>
</compile_context>

<pallas_src>
import functools

import jax
import jax.numpy as jnp
from jax import lax
from jax.experimental import pallas as pl
from jax.experimental.pallas import tpu as pltpu

OUT_PAD = 128   # lane-dense padded output width (Q occupies lanes [0, action_size))
SUBLANE = 16    # bf16 sublane packing -> batch tiles are multiples of 16 rows


def _round_up(x, m):
    return (x + m - 1) // m * m


def _linear(h_bf16, w_ref, b_ref):
    # bf16 x bf16 MXU matmul with f32 accumulation; bias add stays f32.
    return jnp.dot(h_bf16, w_ref[...], preferred_element_type=jnp.float32) + b_ref[...]


def _relu_ln(h, g_ref, b_ref, eps=1e-5, out_dtype=jnp.bfloat16):
    # ReLU + LayerNorm in f32; d = h - mu is reused for variance and output (robust,
    # same pass count).  Output emitted in bf16: it is the next matmul's LHS.
    h = jnp.maximum(h, 0.0)
    mu = jnp.mean(h, axis=-1, keepdims=True)
    d = h - mu
    var = jnp.mean(d * d, axis=-1, keepdims=True)
    s = lax.rsqrt(var + eps) * g_ref[...]
    return (d * s + b_ref[...]).astype(out_dtype)


def dqn_kernel(x_ref,
               w1_ref, b1_ref, g1_ref, be1_ref,
               w2_ref, b2_ref, g2_ref, be2_ref,
               w3_ref, b3_ref, g3_ref, be3_ref,
               w4_ref, b4_ref, g4_ref, be4_ref,
               wh1_ref, bh1_ref, wh2_ref, bh2_ref,
               q_ref, *, action_size):
    x = x_ref[...]  # already bf16

    # feature_layers: Linear -> ReLU -> LayerNorm -> (Dropout=id)  x2
    h = _relu_ln(_linear(x, w1_ref, b1_ref), g1_ref, be1_ref)
    h = _relu_ln(_linear(h, w2_ref, b2_ref), g2_ref, be2_ref)

    # navigation_layers: Linear -> ReLU -> LayerNorm  x2
    h = _relu_ln(_linear(h, w3_ref, b3_ref), g3_ref, be3_ref)
    nav = _relu_ln(_linear(h, w4_ref, b4_ref), g4_ref, be4_ref)

    # Fused dueling heads:
    #   hh   = relu(nav @ [wv1 | wa1] + [bv1 | ba1])                       (TB, 64)
    #   head = hh @ Wh2 + bh2  with lanes [0,A)=advantage, lane A=value,
    #          lanes (A,128) exactly zero (zero weights / bias).           (TB, 128)
    hh = jnp.maximum(_linear(nav, wh1_ref, bh1_ref), 0.0).astype(jnp.bfloat16)
    head = _linear(hh, wh2_ref, bh2_ref)

    v = head[:, action_size:action_size + 1]               # (TB, 1)
    sum_all = jnp.sum(head, axis=-1, keepdims=True)        # = sum(advantages) + v
    mean_a = (sum_all - v) * (1.0 / action_size)
    # Q = V + (A - mean_A); only lanes [0, action_size) are meaningful (sliced in wrapper).
    q_ref[...] = head + (v - mean_a)


def init_params(key, state_size, action_size):
    """Deterministic synthetic parameters (matches module __init__ shapes)."""
    dims = [
        ("w1", (state_size, 512)), ("b1", (1, 512)), ("g1", (1, 512)), ("be1", (1, 512)),
        ("w2", (512, 256)), ("b2", (1, 256)), ("g2", (1, 256)), ("be2", (1, 256)),
        ("w3", (256, 128)), ("b3", (1, 128)), ("g3", (1, 128)), ("be3", (1, 128)),
        ("w4", (128, 64)),  ("b4", (1, 64)),  ("g4", (1, 64)),  ("be4", (1, 64)),
        ("wv1", (64, 32)), ("bv1", (1, 32)), ("wv2", (32, 1)), ("bv2", (1, 1)),
        ("wa1", (64, 32)), ("ba1", (1, 32)), ("wa2", (32, action_size)), ("ba2", (1, action_size)),
    ]
    params = []
    keys = jax.random.split(key, len(dims))
    for (name, shape), k in zip(dims, keys):
        if name.startswith("w"):
            fan_in = shape[0]
            p = jax.random.normal(k, shape, jnp.float32) * (1.0 / jnp.sqrt(fan_in))
        elif name.startswith("g"):        # LayerNorm gamma
            p = jnp.ones(shape, jnp.float32)
        elif name.startswith("be"):       # LayerNorm beta
            p = jnp.zeros(shape, jnp.float32)
        else:                             # Linear bias
            p = jax.random.normal(k, shape, jnp.float32) * 0.01
        params.append(p)
    return params


def prepare_params(params, action_size):
    """Fuse the dueling heads, pad to lane-dense widths, cast weights to bf16 (one-time)."""
    (w1, b1, g1, be1, w2, b2, g2, be2, w3, b3, g3, be3, w4, b4, g4, be4,
     wv1, bv1, wv2, bv2, wa1, ba1, wa2, ba2) = params
    bf16 = jnp.bfloat16

    wh1 = jnp.concatenate([wv1, wa1], axis=1)                 # (64, 64)
    bh1 = jnp.concatenate([bv1, ba1], axis=1)                 # (1, 64)

    wh2 = jnp.zeros((64, OUT_PAD), jnp.float32)
    wh2 = wh2.at[32:64, :action_size].set(wa2)                # advantage from hh[:, 32:64]
    wh2 = wh2.at[0:32, action_size].set(wv2[:, 0])            # value from hh[:, 0:32] -> lane A
    bh2 = jnp.zeros((1, OUT_PAD), jnp.float32)
    bh2 = bh2.at[0, :action_size].set(ba2[0])
    bh2 = bh2.at[0, action_size].set(bv2[0, 0])

    return (w1.astype(bf16), b1, g1, be1,
            w2.astype(bf16), b2, g2, be2,
            w3.astype(bf16), b3, g3, be3,
            w4.astype(bf16), b4, g4, be4,
            wh1.astype(bf16), bh1, wh2.astype(bf16), bh2)


def _pick_tiling(B):
    """Per-generation batch tile cap and VMEM limit; ensure >=2 grid steps when B allows."""
    try:
        kind = jax.devices()[0].device_kind.lower()
    except Exception:
        kind = ""
    big_vmem = ("v5" in kind) or ("v6" in kind)          # 128 MiB physical VMEM
    tb_cap = 2048 if big_vmem else 512                   # conservative on v7x / unknown
    vmem_bytes = (64 if big_vmem else 32) * 1024 * 1024
    # At least two batch tiles once B > SUBLANE, so the "parallel" batch axis can shard
    # across v7x's two TensorCores (harmless single-TC elsewhere).
    TB = max(SUBLANE, _round_up(-(-B // 2), SUBLANE))
    TB = min(TB, tb_cap)
    return TB, vmem_bytes


@functools.partial(jax.jit, static_argnames=("action_size",))
def dqn_forward(x, kernel_params, *, action_size):
    B, state_size = x.shape
    TB, vmem_bytes = _pick_tiling(B)
    B_pad = _round_up(B, TB)

    x = x.astype(jnp.bfloat16)                 # bf16 matmul LHS anyway -> half input DMA
    if B_pad != B:
        x = jnp.pad(x, ((0, B_pad - B), (0, 0)))

    # x / q tiled over batch; every parameter uses a constant index_map -> stays resident.
    in_specs = [pl.BlockSpec((TB, state_size), lambda i: (i, 0))]
    in_specs += [pl.BlockSpec(p.shape, lambda i: (0, 0)) for p in kernel_params]
    out_spec = pl.BlockSpec((TB, OUT_PAD), lambda i: (i, 0))

    q_pad = pl.pallas_call(
        functools.partial(dqn_kernel, action_size=action_size),
        out_shape=jax.ShapeDtypeStruct((B_pad, OUT_PAD), jnp.float32),
        grid=(B_pad // TB,),
        in_specs=in_specs,
        out_specs=out_spec,
        compiler_params=pltpu.CompilerParams(
            dimension_semantics=("parallel",),   # shard batch tiles across TCs on v7x
            vmem_limit_bytes=vmem_bytes),
    )(x, *kernel_params)
    return q_pad[:B, :action_size]


def dqn_forward_ref(x, params):
    """Pure-JAX reference (original layer layout) emulating the kernel's bf16 matmul
    operands with f32 accumulation.  Relative to a strict f32 forward the only
    difference is bf16 quantization of weights / matmul inputs."""
    bf16 = jnp.bfloat16

    def mm(h, w, b):
        return jnp.dot(h.astype(bf16), w.astype(bf16),
                       preferred_element_type=jnp.float32) + b

    def ln(h, g, b, eps=1e-5):
        mu = h.mean(-1, keepdims=True)
        d = h - mu
        var = (d * d).mean(-1, keepdims=True)
        return d * lax.rsqrt(var + eps) * g + b

    (w1, b1, g1, be1, w2, b2, g2, be2, w3, b3, g3, be3, w4, b4, g4, be4,
     wv1, bv1, wv2, bv2, wa1, ba1, wa2, ba2) = params

    h = ln(jnp.maximum(mm(x, w1, b1), 0.0), g1, be1)
    h = ln(jnp.maximum(mm(h, w2, b2), 0.0), g2, be2)
    h = ln(jnp.maximum(mm(h, w3, b3), 0.0), g3, be3)
    nav = ln(jnp.maximum(mm(h, w4, b4), 0.0), g4, be4)
    v = mm(jnp.maximum(mm(nav, wv1, bv1), 0.0), wv2, bv2)
    a = mm(jnp.maximum(mm(nav, wa1, ba1), 0.0), wa2, ba2)
    return v + (a - a.mean(-1, keepdims=True))


if __name__ == "__main__":
    B, STATE_SIZE, ACTION_SIZE = 8, 16, 4
    key = jax.random.PRNGKey(0)
    kx, kp = jax.random.split(key)
    x = jax.random.normal(kx, (B, STATE_SIZE), jnp.float32)
    params = init_params(kp, STATE_SIZE, ACTION_SIZE)
    kernel_params = prepare_params(params, ACTION_SIZE)

    q = dqn_forward(x, kernel_params, action_size=ACTION_SIZE)
    q = jax.block_until_ready(q)

    q_ref = dqn_forward_ref(x, params)
    assert q.shape == (B, ACTION_SIZE)
    assert jnp.allclose(q, q_ref, atol=2e-3, rtol=2e-3), "mismatch vs reference"
    print("KERNEL_OK")
</pallas_src>

<mosaic_0001>
module attributes {stable_mosaic.version = 11 : i64} {
  func.func @dqn_kernel(%arg0: i32, %arg1: memref<16x16xbf16, #tpu.memory_space<vmem>>, %arg2: memref<16x512xbf16, #tpu.memory_space<vmem>>, %arg3: memref<1x512xf32, #tpu.memory_space<vmem>>, %arg4: memref<1x512xf32, #tpu.memory_space<vmem>>, %arg5: memref<1x512xf32, #tpu.memory_space<vmem>>, %arg6: memref<512x256xbf16, #tpu.memory_space<vmem>>, %arg7: memref<1x256xf32, #tpu.memory_space<vmem>>, %arg8: memref<1x256xf32, #tpu.memory_space<vmem>>, %arg9: memref<1x256xf32, #tpu.memory_space<vmem>>, %arg10: memref<256x128xbf16, #tpu.memory_space<vmem>>, %arg11: memref<1x128xf32, #tpu.memory_space<vmem>>, %arg12: memref<1x128xf32, #tpu.memory_space<vmem>>, %arg13: memref<1x128xf32, #tpu.memory_space<vmem>>, %arg14: memref<128x64xbf16, #tpu.memory_space<vmem>>, %arg15: memref<1x64xf32, #tpu.memory_space<vmem>>, %arg16: memref<1x64xf32, #tpu.memory_space<vmem>>, %arg17: memref<1x64xf32, #tpu.memory_space<vmem>>, %arg18: memref<64x64xbf16, #tpu.memory_space<vmem>>, %arg19: memref<1x64xf32, #tpu.memory_space<vmem>>, %arg20: memref<64x128xbf16, #tpu.memory_space<vmem>>, %arg21: memref<1x128xf32, #tpu.memory_space<vmem>>, %arg22: memref<16x128xf32, #tpu.memory_space<vmem>>) attributes {dimension_semantics = [#tpu.dimension_semantics<parallel>], iteration_bounds = array<i64: 1>, scalar_prefetch = 0 : i64, scratch_operands = 0 : i64, tpu.core_type = #tpu.core_type<tc>, window_params = [{transform_indices = @transform_0, window_bounds = array<i64: 16, 16>}, {pipeline_mode = #tpu.pipeline_mode<synchronous>, transform_indices = @transform_1, window_bounds = array<i64: 16, 512>}, {pipeline_mode = #tpu.pipeline_mode<synchronous>, transform_indices = @transform_2, window_bounds = array<i64: 1, 512>}, {pipeline_mode = #tpu.pipeline_mode<synchronous>, transform_indices = @transform_3, window_bounds = array<i64: 1, 512>}, {pipeline_mode = #tpu.pipeline_mode<synchronous>, transform_indices = @transform_4, window_bounds = array<i64: 1, 512>}, {pipeline_mode = #tpu.pipeline_mode<synchronous>, transform_indices = @transform_5, window_bounds = array<i64: 512, 256>}, {pipeline_mode = #tpu.pipeline_mode<synchronous>, transform_indices = @transform_6, window_bounds = array<i64: 1, 256>}, {pipeline_mode = #tpu.pipeline_mode<synchronous>, transform_indices = @transform_7, window_bounds = array<i64: 1, 256>}, {pipeline_mode = #tpu.pipeline_mode<synchronous>, transform_indices = @transform_8, window_bounds = array<i64: 1, 256>}, {pipeline_mode = #tpu.pipeline_mode<synchronous>, transform_indices = @transform_9, window_bounds = array<i64: 256, 128>}, {pipeline_mode = #tpu.pipeline_mode<synchronous>, transform_indices = @transform_10, window_bounds = array<i64: 1, 128>}, {pipeline_mode = #tpu.pipeline_mode<synchronous>, transform_indices = @transform_11, window_bounds = array<i64: 1, 128>}, {pipeline_mode = #tpu.pipeline_mode<synchronous>, transform_indices = @transform_12, window_bounds = array<i64: 1, 128>}, {pipeline_mode = #tpu.pipeline_mode<synchronous>, transform_indices = @transform_13, window_bounds = array<i64: 128, 64>}, {pipeline_mode = #tpu.pipeline_mode<synchronous>, transform_indices = @transform_14, window_bounds = array<i64: 1, 64>}, {pipeline_mode = #tpu.pipeline_mode<synchronous>, transform_indices = @transform_15, window_bounds = array<i64: 1, 64>}, {pipeline_mode = #tpu.pipeline_mode<synchronous>, transform_indices = @transform_16, window_bounds = array<i64: 1, 64>}, {pipeline_mode = #tpu.pipeline_mode<synchronous>, transform_indices = @transform_17, window_bounds = array<i64: 64, 64>}, {pipeline_mode = #tpu.pipeline_mode<synchronous>, transform_indices = @transform_18, window_bounds = array<i64: 1, 64>}, {pipeline_mode = #tpu.pipeline_mode<synchronous>, transform_indices = @transform_19, window_bounds = array<i64: 64, 128>}, {pipeline_mode = #tpu.pipeline_mode<synchronous>, transform_indices = @transform_20, window_bounds = array<i64: 1, 128>}, {transform_indices = @transform_21, window_bounds = array<i64: 16, 128>}]} {
    %c0 = arith.constant 0 : index
    %c0_0 = arith.constant 0 : index
    %0 = vector.load %arg1[%c0, %c0_0] : memref<16x16xbf16, #tpu.memory_space<vmem>>, vector<16x16xbf16>
    %c0_1 = arith.constant 0 : index
    %c0_2 = arith.constant 0 : index
    %1 = vector.load %arg2[%c0_1, %c0_2] : memref<16x512xbf16, #tpu.memory_space<vmem>>, vector<16x512xbf16>
    %cst = arith.constant dense<0.000000e+00> : vector<16x512xf32>
    %2 = tpu.matmul %0, %1, %cst {dimension_numbers = #tpu.dot_dimension_numbers<[1], [0], [0], [1], [0, 0, 1, 1], [], []>} : vector<16x16xbf16>, vector<16x512xbf16>, vector<16x512xf32> -> vector<16x512xf32>
    %c0_3 = arith.constant 0 : index
    %c0_4 = arith.constant 0 : index
    %3 = vector.load %arg3[%c0_3, %c0_4] : memref<1x512xf32, #tpu.memory_space<vmem>>, vector<1x512xf32>
    %4 = vector.broadcast %3 : vector<1x512xf32> to vector<16x512xf32>
    %5 = arith.addf %2, %4 : vector<16x512xf32>
    %cst_5 = arith.constant 0.000000e+00 : f32
    %6 = vector.broadcast %cst_5 : f32 to vector<16x512xf32>
    %7 = arith.maximumf %5, %6 : vector<16x512xf32>
    %cst_6 = arith.constant dense<0.000000e+00> : vector<16xf32>
    %8 = vector.multi_reduction <add>, %7, %cst_6 [1] : vector<16x512xf32> to vector<16xf32>
    %9 = vector.shape_cast %8 : vector<16xf32> to vector<16x1xf32>
    %cst_7 = arith.constant 5.120000e+02 : f32
    %10 = vector.broadcast %cst_7 : f32 to vector<16x1xf32>
    %11 = arith.divf %9, %10 : vector<16x1xf32>
    %12 = vector.broadcast %11 : vector<16x1xf32> to vector<16x512xf32>
    %13 = arith.subf %7, %12 : vector<16x512xf32>
    %14 = arith.mulf %13, %13 : vector<16x512xf32>
    %cst_8 = arith.constant dense<0.000000e+00> : vector<16xf32>
    %15 = vector.multi_reduction <add>, %14, %cst_8 [1] : vector<16x512xf32> to vector<16xf32>
    %16 = vector.shape_cast %15 : vector<16xf32> to vector<16x1xf32>
    %cst_9 = arith.constant 5.120000e+02 : f32
    %17 = vector.broadcast %cst_9 : f32 to vector<16x1xf32>
    %18 = arith.divf %16, %17 : vector<16x1xf32>
    %cst_10 = arith.constant 9.99999974E-6 : f32
    %19 = vector.broadcast %cst_10 : f32 to vector<16x1xf32>
    %20 = arith.addf %18, %19 : vector<16x1xf32>
    %21 = math.rsqrt %20 : vector<16x1xf32>
    %c0_11 = arith.constant 0 : index
    %c0_12 = arith.constant 0 : index
    %22 = vector.load %arg4[%c0_11, %c0_12] : memref<1x512xf32, #tpu.memory_space<vmem>>, vector<1x512xf32>
    %23 = vector.broadcast %21 : vector<16x1xf32> to vector<16x512xf32>
    %24 = vector.broadcast %22 : vector<1x512xf32> to vector<16x512xf32>
    %25 = arith.mulf %23, %24 : vector<16x512xf32>
    %26 = arith.mulf %13, %25 : vector<16x512xf32>
    %c0_13 = arith.constant 0 : index
    %c0_14 = arith.constant 0 : index
    %27 = vector.load %arg5[%c0_13, %c0_14] : memref<1x512xf32, #tpu.memory_space<vmem>>, vector<1x512xf32>
    %28 = vector.broadcast %27 : vector<1x512xf32> to vector<16x512xf32>
    %29 = arith.addf %26, %28 : vector<16x512xf32>
    %30 = arith.truncf %29 : vector<16x512xf32> to vector<16x512xbf16>
    %c0_15 = arith.constant 0 : index
    %c0_16 = arith.constant 0 : index
    %31 = vector.load %arg6[%c0_15, %c0_16] : memref<512x256xbf16, #tpu.memory_space<vmem>>, vector<512x256xbf16>
    %cst_17 = arith.constant dense<0.000000e+00> : vector<16x256xf32>
    %32 = tpu.matmul %30, %31, %cst_17 {dimension_numbers = #tpu.dot_dimension_numbers<[1], [0], [0], [1], [0, 0, 1, 1], [], []>} : vector<16x512xbf16>, vector<512x256xbf16>, vector<16x256xf32> -> vector<16x256xf32>
    %c0_18 = arith.constant 0 : index
    %c0_19 = arith.constant 0 : index
    %33 = vector.load %arg7[%c0_18, %c0_19] : memref<1x256xf32, #tpu.memory_space<vmem>>, vector<1x256xf32>
    %34 = vector.broadcast %33 : vector<1x256xf32> to vector<16x256xf32>
    %35 = arith.addf %32, %34 : vector<16x256xf32>
    %cst_20 = arith.constant 0.000000e+00 : f32
    %36 = vector.broadcast %cst_20 : f32 to vector<16x256xf32>
    %37 = arith.maximumf %35, %36 : vector<16x256xf32>
    %cst_21 = arith.constant dense<0.000000e+00> : vector<16xf32>
    %38 = vector.multi_reduction <add>, %37, %cst_21 [1] : vector<16x256xf32> to vector<16xf32>
    %39 = vector.shape_cast %38 : vector<16xf32> to vector<16x1xf32>
    %cst_22 = arith.constant 2.560000e+02 : f32
    %40 = vector.broadcast %cst_22 : f32 to vector<16x1xf32>
    %41 = arith.divf %39, %40 : vector<16x1xf32>
    %42 = vector.broadcast %41 : vector<16x1xf32> to vector<16x256xf32>
    %43 = arith.subf %37, %42 : vector<16x256xf32>
    %44 = arith.mulf %43, %43 : vector<16x256xf32>
    %cst_23 = arith.constant dense<0.000000e+00> : vector<16xf32>
    %45 = vector.multi_reduction <add>, %44, %cst_23 [1] : vector<16x256xf32> to vector<16xf32>
    %46 = vector.shape_cast %45 : vector<16xf32> to vector<16x1xf32>
    %cst_24 = arith.constant 2.560000e+02 : f32
    %47 = vector.broadcast %cst_24 : f32 to vector<16x1xf32>
    %48 = arith.divf %46, %47 : vector<16x1xf32>
    %cst_25 = arith.constant 9.99999974E-6 : f32
    %49 = vector.broadcast %cst_25 : f32 to vector<16x1xf32>
    %50 = arith.addf %48, %49 : vector<16x1xf32>
    %51 = math.rsqrt %50 : vector<16x1xf32>
    %c0_26 = arith.constant 0 : index
    %c0_27 = arith.constant 0 : index
    %52 = vector.load %arg8[%c0_26, %c0_27] : memref<1x256xf32, #tpu.memory_space<vmem>>, vector<1x256xf32>
    %53 = vector.broadcast %51 : vector<16x1xf32> to vector<16x256xf32>
    %54 = vector.broadcast %52 : vector<1x256xf32> to vector<16x256xf32>
    %55 = arith.mulf %53, %54 : vector<16x256xf32>
    %56 = arith.mulf %43, %55 : vector<16x256xf32>
    %c0_28 = arith.constant 0 : index
    %c0_29 = arith.constant 0 : index
    %57 = vector.load %arg9[%c0_28, %c0_29] : memref<1x256xf32, #tpu.memory_space<vmem>>, vector<1x256xf32>
    %58 = vector.broadcast %57 : vector<1x256xf32> to vector<16x256xf32>
    %59 = arith.addf %56, %58 : vector<16x256xf32>
    %60 = arith.truncf %59 : vector<16x256xf32> to vector<16x256xbf16>
    %c0_30 = arith.constant 0 : index
    %c0_31 = arith.constant 0 : index
    %61 = vector.load %arg10[%c0_30, %c0_31] : memref<256x128xbf16, #tpu.memory_space<vmem>>, vector<256x128xbf16>
    %cst_32 = arith.constant dense<0.000000e+00> : vector<16x128xf32>
    %62 = tpu.matmul %60, %61, %cst_32 {dimension_numbers = #tpu.dot_dimension_numbers<[1], [0], [0], [1], [0, 0, 1, 1], [], []>} : vector<16x256xbf16>, vector<256x128xbf16>, vector<16x128xf32> -> vector<16x128xf32>
    %c0_33 = arith.constant 0 : index
    %c0_34 = arith.constant 0 : index
    %63 = vector.load %arg11[%c0_33, %c0_34] : memref<1x128xf32, #tpu.memory_space<vmem>>, vector<1x128xf32>
    %64 = vector.broadcast %63 : vector<1x128xf32> to vector<16x128xf32>
    %65 = arith.addf %62, %64 : vector<16x128xf32>
    %cst_35 = arith.constant 0.000000e+00 : f32
    %66 = vector.broadcast %cst_35 : f32 to vector<16x128xf32>
    %67 = arith.maximumf %65, %66 : vector<16x128xf32>
    %cst_36 = arith.constant dense<0.000000e+00> : vector<16xf32>
    %68 = vector.multi_reduction <add>, %67, %cst_36 [1] : vector<16x128xf32> to vector<16xf32>
    %69 = vector.shape_cast %68 : vector<16xf32> to vector<16x1xf32>
    %cst_37 = arith.constant 1.280000e+02 : f32
    %70 = vector.broadcast %cst_37 : f32 to vector<16x1xf32>
    %71 = arith.divf %69, %70 : vector<16x1xf32>
    %72 = vector.broadcast %71 : vector<16x1xf32> to vector<16x128xf32>
    %73 = arith.subf %67, %72 : vector<16x128xf32>
    %74 = arith.mulf %73, %73 : vector<16x128xf32>
    %cst_38 = arith.constant dense<0.000000e+00> : vector<16xf32>
    %75 = vector.multi_reduction <add>, %74, %cst_38 [1] : vector<16x128xf32> to vector<16xf32>
    %76 = vector.shape_cast %75 : vector<16xf32> to vector<16x1xf32>
    %cst_39 = arith.constant 1.280000e+02 : f32
    %77 = vector.broadcast %cst_39 : f32 to vector<16x1xf32>
    %78 = arith.divf %76, %77 : vector<16x1xf32>
    %cst_40 = arith.constant 9.99999974E-6 : f32
    %79 = vector.broadcast %cst_40 : f32 to vector<16x1xf32>
    %80 = arith.addf %78, %79 : vector<16x1xf32>
    %81 = math.rsqrt %80 : vector<16x1xf32>
    %c0_41 = arith.constant 0 : index
    %c0_42 = arith.constant 0 : index
    %82 = vector.load %arg12[%c0_41, %c0_42] : memref<1x128xf32, #tpu.memory_space<vmem>>, vector<1x128xf32>
    %83 = vector.broadcast %81 : vector<16x1xf32> to vector<16x128xf32>
    %84 = vector.broadcast %82 : vector<1x128xf32> to vector<16x128xf32>
    %85 = arith.mulf %83, %84 : vector<16x128xf32>
    %86 = arith.mulf %73, %85 : vector<16x128xf32>
    %c0_43 = arith.constant 0 : index
    %c0_44 = arith.constant 0 : index
    %87 = vector.load %arg13[%c0_43, %c0_44] : memref<1x128xf32, #tpu.memory_space<vmem>>, vector<1x128xf32>
    %88 = vector.broadcast %87 : vector<1x128xf32> to vector<16x128xf32>
    %89 = arith.addf %86, %88 : vector<16x128xf32>
    %90 = arith.truncf %89 : vector<16x128xf32> to vector<16x128xbf16>
    %c0_45 = arith.constant 0 : index
    %c0_46 = arith.constant 0 : index
    %91 = vector.load %arg14[%c0_45, %c0_46] : memref<128x64xbf16, #tpu.memory_space<vmem>>, vector<128x64xbf16>
    %cst_47 = arith.constant dense<0.000000e+00> : vector<16x64xf32>
    %92 = tpu.matmul %90, %91, %cst_47 {dimension_numbers = #tpu.dot_dimension_numbers<[1], [0], [0], [1], [0, 0, 1, 1], [], []>} : vector<16x128xbf16>, vector<128x64xbf16>, vector<16x64xf32> -> vector<16x64xf32>
    %c0_48 = arith.constant 0 : index
    %c0_49 = arith.constant 0 : index
    %93 = vector.load %arg15[%c0_48, %c0_49] : memref<1x64xf32, #tpu.memory_space<vmem>>, vector<1x64xf32>
    %94 = vector.broadcast %93 : vector<1x64xf32> to vector<16x64xf32>
    %95 = arith.addf %92, %94 : vector<16x64xf32>
    %cst_50 = arith.constant 0.000000e+00 : f32
    %96 = vector.broadcast %cst_50 : f32 to vector<16x64xf32>
    %97 = arith.maximumf %95, %96 : vector<16x64xf32>
    %cst_51 = arith.constant dense<0.000000e+00> : vector<16xf32>
    %98 = vector.multi_reduction <add>, %97, %cst_51 [1] : vector<16x64xf32> to vector<16xf32>
    %99 = vector.shape_cast %98 : vector<16xf32> to vector<16x1xf32>
    %cst_52 = arith.constant 6.400000e+01 : f32
    %100 = vector.broadcast %cst_52 : f32 to vector<16x1xf32>
    %101 = arith.divf %99, %100 : vector<16x1xf32>
    %102 = vector.broadcast %101 : vector<16x1xf32> to vector<16x64xf32>
    %103 = arith.subf %97, %102 : vector<16x64xf32>
    %104 = arith.mulf %103, %103 : vector<16x64xf32>
    %cst_53 = arith.constant dense<0.000000e+00> : vector<16xf32>
    %105 = vector.multi_reduction <add>, %104, %cst_53 [1] : vector<16x64xf32> to vector<16xf32>
    %106 = vector.shape_cast %105 : vector<16xf32> to vector<16x1xf32>
    %cst_54 = arith.constant 6.400000e+01 : f32
    %107 = vector.broadcast %cst_54 : f32 to vector<16x1xf32>
    %108 = arith.divf %106, %107 : vector<16x1xf32>
    %cst_55 = arith.constant 9.99999974E-6 : f32
    %109 = vector.broadcast %cst_55 : f32 to vector<16x1xf32>
    %110 = arith.addf %108, %109 : vector<16x1xf32>
    %111 = math.rsqrt %110 : vector<16x1xf32>
    %c0_56 = arith.constant 0 : index
    %c0_57 = arith.constant 0 : index
    %112 = vector.load %arg16[%c0_56, %c0_57] : memref<1x64xf32, #tpu.memory_space<vmem>>, vector<1x64xf32>
    %113 = vector.broadcast %111 : vector<16x1xf32> to vector<16x64xf32>
    %114 = vector.broadcast %112 : vector<1x64xf32> to vector<16x64xf32>
    %115 = arith.mulf %113, %114 : vector<16x64xf32>
    %116 = arith.mulf %103, %115 : vector<16x64xf32>
    %c0_58 = arith.constant 0 : index
    %c0_59 = arith.constant 0 : index
    %117 = vector.load %arg17[%c0_58, %c0_59] : memref<1x64xf32, #tpu.memory_space<vmem>>, vector<1x64xf32>
    %118 = vector.broadcast %117 : vector<1x64xf32> to vector<16x64xf32>
    %119 = arith.addf %116, %118 : vector<16x64xf32>
    %120 = arith.truncf %119 : vector<16x64xf32> to vector<16x64xbf16>
    %c0_60 = arith.constant 0 : index
    %c0_61 = arith.constant 0 : index
    %121 = vector.load %arg18[%c0_60, %c0_61] : memref<64x64xbf16, #tpu.memory_space<vmem>>, vector<64x64xbf16>
    %cst_62 = arith.constant dense<0.000000e+00> : vector<16x64xf32>
    %122 = tpu.matmul %120, %121, %cst_62 {dimension_numbers = #tpu.dot_dimension_numbers<[1], [0], [0], [1], [0, 0, 1, 1], [], []>} : vector<16x64xbf16>, vector<64x64xbf16>, vector<16x64xf32> -> vector<16x64xf32>
    %c0_63 = arith.constant 0 : index
    %c0_64 = arith.constant 0 : index
    %123 = vector.load %arg19[%c0_63, %c0_64] : memref<1x64xf32, #tpu.memory_space<vmem>>, vector<1x64xf32>
    %124 = vector.broadcast %123 : vector<1x64xf32> to vector<16x64xf32>
    %125 = arith.addf %122, %124 : vector<16x64xf32>
    %cst_65 = arith.constant 0.000000e+00 : f32
    %126 = vector.broadcast %cst_65 : f32 to vector<16x64xf32>
    %127 = arith.maximumf %125, %126 : vector<16x64xf32>
    %128 = arith.truncf %127 : vector<16x64xf32> to vector<16x64xbf16>
    %c0_66 = arith.constant 0 : index
    %c0_67 = arith.constant 0 : index
    %129 = vector.load %arg20[%c0_66, %c0_67] : memref<64x128xbf16, #tpu.memory_space<vmem>>, vector<64x128xbf16>
    %cst_68 = arith.constant dense<0.000000e+00> : vector<16x128xf32>
    %130 = tpu.matmul %128, %129, %cst_68 {dimension_numbers = #tpu.dot_dimension_numbers<[1], [0], [0], [1], [0, 0, 1, 1], [], []>} : vector<16x64xbf16>, vector<64x128xbf16>, vector<16x128xf32> -> vector<16x128xf32>
    %c0_69 = arith.constant 0 : index
    %c0_70 = arith.constant 0 : index
    %131 = vector.load %arg21[%c0_69, %c0_70] : memref<1x128xf32, #tpu.memory_space<vmem>>, vector<1x128xf32>
    %132 = vector.broadcast %131 : vector<1x128xf32> to vector<16x128xf32>
    %133 = arith.addf %130, %132 : vector<16x128xf32>
    %134 = vector.extract_strided_slice %133 {offsets = [0, 4], sizes = [16, 1], strides = [1, 1]} : vector<16x128xf32> to vector<16x1xf32>
    %cst_71 = arith.constant dense<0.000000e+00> : vector<16xf32>
    %135 = vector.multi_reduction <add>, %133, %cst_71 [1] : vector<16x128xf32> to vector<16xf32>
    %136 = vector.shape_cast %135 : vector<16xf32> to vector<16x1xf32>
    %137 = arith.subf %136, %134 : vector<16x1xf32>
    %cst_72 = arith.constant 2.500000e-01 : f32
    %138 = vector.broadcast %cst_72 : f32 to vector<16x1xf32>
    %139 = arith.mulf %137, %138 : vector<16x1xf32>
    %140 = arith.subf %134, %139 : vector<16x1xf32>
    %141 = vector.broadcast %140 : vector<16x1xf32> to vector<16x128xf32>
    %142 = arith.addf %133, %141 : vector<16x128xf32>
    %c0_73 = arith.constant 0 : index
    %c0_74 = arith.constant 0 : index
    %143 = vector.load %arg22[%c0_73, %c0_74] : memref<16x128xf32, #tpu.memory_space<vmem>>, vector<16x128xf32>
    tpu.vector_store %arg22[%c0_73, %c0_74], %142 {strides = array<i32>} : memref<16x128xf32, #tpu.memory_space<vmem>>, vector<16x128xf32>,
    return
  }
  func.func @transform_0(%arg0: i32) -> (i32, i32) {
    %c0_i32 = arith.constant 0 : i32
    %c0_i32_0 = arith.constant 0 : i32
    return %arg0, %c0_i32 : i32, i32
  }
  func.func @transform_1(%arg0: i32) -> (i32, i32) {
    %c0_i32 = arith.constant 0 : i32
    %c0_i32_0 = arith.constant 0 : i32
    %c0_i32_1 = arith.constant 0 : i32
    return %c0_i32, %c0_i32_0 : i32, i32
  }
  func.func @transform_2(%arg0: i32) -> (i32, i32) {
    %c0_i32 = arith.constant 0 : i32
    %c0_i32_0 = arith.constant 0 : i32
    %c0_i32_1 = arith.constant 0 : i32
    return %c0_i32, %c0_i32_0 : i32, i32
  }
  func.func @transform_3(%arg0: i32) -> (i32, i32) {
    %c0_i32 = arith.constant 0 : i32
    %c0_i32_0 = arith.constant 0 : i32
    %c0_i32_1 = arith.constant 0 : i32
    return %c0_i32, %c0_i32_0 : i32, i32
  }
  func.func @transform_4(%arg0: i32) -> (i32, i32) {
    %c0_i32 = arith.constant 0 : i32
    %c0_i32_0 = arith.constant 0 : i32
    %c0_i32_1 = arith.constant 0 : i32
    return %c0_i32, %c0_i32_0 : i32, i32
  }
  func.func @transform_5(%arg0: i32) -> (i32, i32) {
    %c0_i32 = arith.constant 0 : i32
    %c0_i32_0 = arith.constant 0 : i32
    %c0_i32_1 = arith.constant 0 : i32
    return %c0_i32, %c0_i32_0 : i32, i32
  }
  func.func @transform_6(%arg0: i32) -> (i32, i32) {
    %c0_i32 = arith.constant 0 : i32
    %c0_i32_0 = arith.constant 0 : i32
    %c0_i32_1 = arith.constant 0 : i32
    return %c0_i32, %c0_i32_0 : i32, i32
  }
  func.func @transform_7(%arg0: i32) -> (i32, i32) {
    %c0_i32 = arith.constant 0 : i32
    %c0_i32_0 = arith.constant 0 : i32
    %c0_i32_1 = arith.constant 0 : i32
    return %c0_i32, %c0_i32_0 : i32, i32
  }
  func.func @transform_8(%arg0: i32) -> (i32, i32) {
    %c0_i32 = arith.constant 0 : i32
    %c0_i32_0 = arith.constant 0 : i32
    %c0_i32_1 = arith.constant 0 : i32
    return %c0_i32, %c0_i32_0 : i32, i32
  }
  func.func @transform_9(%arg0: i32) -> (i32, i32) {
    %c0_i32 = arith.constant 0 : i32
    %c0_i32_0 = arith.constant 0 : i32
    %c0_i32_1 = arith.constant 0 : i32
    return %c0_i32, %c0_i32_0 : i32, i32
  }
  func.func @transform_10(%arg0: i32) -> (i32, i32) {
    %c0_i32 = arith.constant 0 : i32
    %c0_i32_0 = arith.constant 0 : i32
    %c0_i32_1 = arith.constant 0 : i32
    return %c0_i32, %c0_i32_0 : i32, i32
  }
  func.func @transform_11(%arg0: i32) -> (i32, i32) {
    %c0_i32 = arith.constant 0 : i32
    %c0_i32_0 = arith.constant 0 : i32
    %c0_i32_1 = arith.constant 0 : i32
    return %c0_i32, %c0_i32_0 : i32, i32
  }
  func.func @transform_12(%arg0: i32) -> (i32, i32) {
    %c0_i32 = arith.constant 0 : i32
    %c0_i32_0 = arith.constant 0 : i32
    %c0_i32_1 = arith.constant 0 : i32
    return %c0_i32, %c0_i32_0 : i32, i32
  }
  func.func @transform_13(%arg0: i32) -> (i32, i32) {
    %c0_i32 = arith.constant 0 : i32
    %c0_i32_0 = arith.constant 0 : i32
    %c0_i32_1 = arith.constant 0 : i32
    return %c0_i32, %c0_i32_0 : i32, i32
  }
  func.func @transform_14(%arg0: i32) -> (i32, i32) {
    %c0_i32 = arith.constant 0 : i32
    %c0_i32_0 = arith.constant 0 : i32
    %c0_i32_1 = arith.constant 0 : i32
    return %c0_i32, %c0_i32_0 : i32, i32
  }
  func.func @transform_15(%arg0: i32) -> (i32, i32) {
    %c0_i32 = arith.constant 0 : i32
    %c0_i32_0 = arith.constant 0 : i32
    %c0_i32_1 = arith.constant 0 : i32
    return %c0_i32, %c0_i32_0 : i32, i32
  }
  func.func @transform_16(%arg0: i32) -> (i32, i32) {
    %c0_i32 = arith.constant 0 : i32
    %c0_i32_0 = arith.constant 0 : i32
    %c0_i32_1 = arith.constant 0 : i32
    return %c0_i32, %c0_i32_0 : i32, i32
  }
  func.func @transform_17(%arg0: i32) -> (i32, i32) {
    %c0_i32 = arith.constant 0 : i32
    %c0_i32_0 = arith.constant 0 : i32
    %c0_i32_1 = arith.constant 0 : i32
    return %c0_i32, %c0_i32_0 : i32, i32
  }
  func.func @transform_18(%arg0: i32) -> (i32, i32) {
    %c0_i32 = arith.constant 0 : i32
    %c0_i32_0 = arith.constant 0 : i32
    %c0_i32_1 = arith.constant 0 : i32
    return %c0_i32, %c0_i32_0 : i32, i32
  }
  func.func @transform_19(%arg0: i32) -> (i32, i32) {
    %c0_i32 = arith.constant 0 : i32
    %c0_i32_0 = arith.constant 0 : i32
    %c0_i32_1 = arith.constant 0 : i32
    return %c0_i32, %c0_i32_0 : i32, i32
  }
  func.func @transform_20(%arg0: i32) -> (i32, i32) {
    %c0_i32 = arith.constant 0 : i32
    %c0_i32_0 = arith.constant 0 : i32
    %c0_i32_1 = arith.constant 0 : i32
    return %c0_i32, %c0_i32_0 : i32, i32
  }
  func.func @transform_21(%arg0: i32) -> (i32, i32) {
    %c0_i32 = arith.constant 0 : i32
    %c0_i32_0 = arith.constant 0 : i32
    return %arg0, %c0_i32 : i32, i32
  }
}

</mosaic_0001>

<bundles_post_ra>
// kernel: dqn_forward.1
= control target key start
LH: loop header
LB: loop body
LE: loop exit
PB: predicated region body
PF: predicated region fallthrough
CT: control target
= control target key end

     0   :  { %s2742_s0 = inlined_call_operand.vmem [shape: bf16[16,16], index: 0, kind: input, shape index: {}]   ;;  %s2743_s1 = inlined_call_operand.vmem [shape: bf16[16,512], index: 1, kind: input, shape index: {}]   ;;  %s2744_s2 = inlined_call_operand.vmem [shape: f32[1,512], index: 2, kind: input, shape index: {}]   ;;  %s2745_s3 = inlined_call_operand.hbm [shape: f32[1,512], index: 3, kind: input, shape index: {}]   ;;  %s2746_s4 = inlined_call_operand.hbm [shape: f32[1,512], index: 4, kind: input, shape index: {}]   ;;  %s2747_s5 = inlined_call_operand.hbm [shape: bf16[512,256], index: 5, kind: input, shape index: {}]   ;;  %s2748_s6 = inlined_call_operand.hbm [shape: f32[1,256], index: 6, kind: input, shape index: {}]   ;;  %s2749_s7 = inlined_call_operand.hbm [shape: f32[1,256], index: 7, kind: input, shape index: {}]   ;;  %s2750_s8 = inlined_call_operand.hbm [shape: f32[1,256], index: 8, kind: input, shape index: {}]   ;;  %s2751_s9 = inlined_call_operand.hbm [shape: bf16[256,128], index: 9, kind: input, shape index: {}]   ;;  %s2752_s10 = inlined_call_operand.vmem [shape: f32[1,128], index: 10, kind: input, shape index: {}]   ;;  %s2753_s11 = inlined_call_operand.hbm [shape: f32[1,128], index: 11, kind: input, shape index: {}]   ;;  %s2754_s12 = inlined_call_operand.hbm [shape: f32[1,128], index: 12, kind: input, shape index: {}]   ;;  %s2755_s13 = inlined_call_operand.vmem [shape: bf16[128,64], index: 13, kind: input, shape index: {}]   ;;  %s2756_s14 = inlined_call_operand.vmem [shape: f32[1,64], index: 14, kind: input, shape index: {}]   ;;  %s2757_s15 = inlined_call_operand.hbm [shape: f32[1,64], index: 15, kind: input, shape index: {}]   ;;  %s2758_s16 = inlined_call_operand.vmem [shape: f32[1,64], index: 16, kind: input, shape index: {}]   ;;  %s2759_s17 = inlined_call_operand.vmem [shape: bf16[64,64], index: 17, kind: input, shape index: {}]   ;;  %s2760_s18 = inlined_call_operand.vmem [shape: f32[1,64], index: 18, kind: input, shape index: {}]   ;;  %s2761_s19 = inlined_call_operand.vmem [shape: bf16[64,128], index: 19, kind: input, shape index: {}]   ;;  %s2762_s20 = inlined_call_operand.vmem [shape: f32[1,128], index: 20, kind: input, shape index: {}]   ;;  %s2763_s21 = inlined_call_operand.vmem [shape: f32[16,128], index: 21, kind: output, shape index: {}]  }
   0x1   :  { %2765 = sst [smem:[#allocation24_spill]] %s2742_s0 }
   0x2   :  { %2766 = sst [smem:[#allocation25_spill]] %s2743_s1 }
   0x3   :  { %2767 = sst [smem:[#allocation26_spill]] %s2744_s2 }
   0x4   :  { %2768 = sst [smem:[#allocation27_spill]] %s2745_s3 }
   0x5   :  { %2769 = sst [smem:[#allocation28_spill]] %s2746_s4 }
   0x6   :  { %2770 = sst [smem:[#allocation29_spill]] %s2747_s5 }
   0x7   :  { %26 = vsyncpa [#allocation3], 0 }
   0x8   :  { %27 = vsyncpa [#allocation5], 0 }
   0x9   :  { %28 = vsyncpa [#allocation8], 0 }
   0xa   :  { %29 = vsyncpa [#allocation11], 0 }
   0xb   :  { %30 = vsyncpa [#allocation14], 0  ;;  %s2771_s26 = sld [smem:[#allocation28_spill]] }
  0x11   :  { %s54_s27 = sshll.u32 %s2771_s26, 4  ;;  %s55_s27 = int_to_ptr.hbm [resolvable:$true] %s54_s27 }
  0x12   :  { %31 = vsyncpa [#allocation17], 0  ;;  %s2350_s3 = smov [#allocation4]   ;;  %s78_s4 = sshll.u32 %s2748_s6, 4  ;;  %s79_s4 = int_to_ptr.hbm [resolvable:$true] %s78_s4 }
  0x13   :  { %s56_s28 = sshll.u32 %s2350_s3, 4  ;;  %s2351_s30 = smov [#allocation7]   ;;  %s57_s28 = int_to_ptr.vmem [resolvable:$true] %s56_s28 }
  0x14   :  { %59 = dma.hbm_to_vmem [thread:$0]  %s55_s27, 64, %s57_s28, [#allocation5]  }
  0x15   :  { %s80_s5 = sshll.u32 %s2351_s30, 4  ;;  %s100_s1 = sshll.u32 %s2750_s8, 4  ;;  %s81_s5 = int_to_ptr.vmem [resolvable:$true] %s80_s5  ;;  %s101_s1 = int_to_ptr.hbm [resolvable:$true] %s100_s1 }
  0x16   :  { %83 = dma.hbm_to_vmem [thread:$0]  %s79_s4, 32, %s81_s5, [#allocation8]  }
  0x17   :  { %s126_s25 = sshll.u32 %s2753_s11, 4  ;;  %s2352_s26 = smov [#allocation10]   ;;  %s127_s25 = int_to_ptr.hbm [resolvable:$true] %s126_s25 }
  0x18   :  { %s102_s3 = sshll.u32 %s2352_s26, 4  ;;  %s2353_s6 = smov [#allocation13]   ;;  %s103_s3 = int_to_ptr.vmem [resolvable:$true] %s102_s3 }
  0x19   :  { %105 = dma.hbm_to_vmem [thread:$0]  %s101_s1, 32, %s103_s3, [#allocation11]  }
  0x1a   :  { %s128_s27 = sshll.u32 %s2353_s6, 4  ;;  %s2772_s0 = sld [smem:[#allocation27_spill]]  ;;  %s129_s27 = int_to_ptr.vmem [resolvable:$true] %s128_s27 }
  0x1b   :  { %131 = dma.hbm_to_vmem [thread:$0]  %s127_s25, 16, %s129_s27, [#allocation14]  }
  0x1c   :  { %s2773_s5 = sld [smem:[#allocation29_spill]]  ;;  %s2354_s23 = smov [#allocation2]  }
  0x1d   :  { %s45_s11 = sshll.u32 %s2354_s23, 4  ;;  %s2355_s24 = smov [#allocation6]   ;;  %s46_s11 = int_to_ptr.vmem [resolvable:$true] %s45_s11 }
  0x1e   :  { %s66_s1 = sshll.u32 %s2355_s24, 4  ;;  %s2356_s2 = smov 128   ;;  %s67_s1 = int_to_ptr.vmem [resolvable:$true] %s66_s1 }
  0x1f   :  { %s2357_s26 = smov 8   ;;  %s89_s28 = sshll.u32 %s2749_s7, 4  ;;  %s90_s28 = int_to_ptr.hbm [resolvable:$true] %s89_s28 }
  0x20   :  { %s43_s30 = sshll.u32 %s2772_s0, 4  ;;  %s2358_s25 = smov [#allocation9]   ;;  %s44_s30 = int_to_ptr.hbm [resolvable:$true] %s43_s30 }
  0x21   :  { %48 = dma.hbm_to_vmem [thread:$0]  %s44_s30, 64, %s46_s11, [#allocation3]  }
  0x22   :  { %s64_s22 = sshll.u32 %s2773_s5, 4  ;;  %s91_s27 = sshll.u32 %s2358_s25, 4  ;;  %s65_s22 = int_to_ptr.hbm [resolvable:$true] %s64_s22  ;;  %s92_s27 = int_to_ptr.vmem [resolvable:$true] %s91_s27 }
  0x23   :  { %72 = dma.hbm_to_vmem [thread:$0]  %s65_s22, 8192, %s67_s1, [#allocation5], %s2356_s2, %s2356_s2, %s2357_s26  }
  0x24   :  { %s110_s8 = sshll.u32 %s2751_s9, 4  ;;  %s2359_s30 = smov [#allocation12]   ;;  %s111_s8 = int_to_ptr.hbm [resolvable:$true] %s110_s8 }
  0x25   :  { %94 = dma.hbm_to_vmem [thread:$0]  %s90_s28, 32, %s92_s27, [#allocation8]  }
  0x26   :  { %s112_s4 = sshll.u32 %s2359_s30, 4  ;;  %s2360_s5 = smov 64   ;;  %s113_s4 = int_to_ptr.vmem [resolvable:$true] %s112_s4 }
  0x27   :  { %s2361_s23 = smov 4   ;;  %s137_s7 = sshll.u32 %s2754_s12, 4  ;;  %s138_s7 = int_to_ptr.hbm [resolvable:$true] %s137_s7 }
  0x28   :  { %118 = dma.hbm_to_vmem [thread:$0]  %s111_s8, 2048, %s113_s4, [#allocation11], %s2360_s5, %s2360_s5, %s2361_s23  }
  0x29   :  { %s2362_s24 = smov [#allocation15]   ;;  %s152_s9 = sshll.u32 %s2757_s15, 4  ;;  %s153_s9 = int_to_ptr.hbm [resolvable:$true] %s152_s9 }
  0x2a   :  { %s139_s1 = sshll.u32 %s2362_s24, 4  ;;  %s2363_s3 = smov [#allocation16]   ;;  %s140_s1 = int_to_ptr.vmem [resolvable:$true] %s139_s1 }
  0x2b   :  { %142 = dma.hbm_to_vmem [thread:$0]  %s138_s7, 16, %s140_s1, [#allocation14]  }
  0x2c   :  { %s154_s6 = sshll.u32 %s2363_s3, 4  ;;  %s155_s6 = int_to_ptr.vmem [resolvable:$true] %s154_s6 }
  0x2d   :  { %157 = dma.hbm_to_vmem [thread:$0]  %s153_s9, 16, %s155_s6, [#allocation17]  }
  0x2e   :  { %2338 = dma.done.wait [#allocation3], 64  }
  0x2f   :  { %2339 = vsyncadd [#allocation3], 4294967232 }
  0x30   :  { %2340 = dma.done.wait [#allocation5], 8256  }
  0x31   :  { %2341 = vsyncadd [#allocation5], 4294959040 }
  0x32   :  { %2342 = dma.done.wait [#allocation8], 64  }
  0x33   :  { %2343 = vsyncadd [#allocation8], 4294967232 }
  0x34   :  { %2344 = dma.done.wait [#allocation11], 2080  }
  0x35   :  { %2345 = vsyncadd [#allocation11], 4294965216 }
  0x36   :  { %2346 = dma.done.wait [#allocation14], 32  }
  0x37   :  { %2347 = vsyncadd [#allocation14], 4294967264 }
  0x38   :  { %2348 = dma.done.wait [#allocation17], 16  }
  0x39   :  { %2349 = vsyncadd [#allocation17], 4294967280  ;;  %s2774_s28 = sld [smem:[#allocation25_spill]]  ;;  %vm250_vm0 = vcmask 130048   ;;  %v2364_v48 = vmov 512.0  }
  0x3a   :  { %s2775_s9 = sld [smem:[#allocation24_spill]]  ;;  %2074 = vrcp.f32 %v2364_v48  ;;  %v1616_v52 = vld [vmem:[#allocation6 + $0x70] sm:$0xf]  ;;  %v1964_v53 = vld [vmem:[#allocation6 + $0x74] sm:$0xf0] }
  0x3b   :  { %s2776_s12 = sld [smem:[#allocation26_spill]]  ;;  %v1680_v54 = vld [vmem:[#allocation6 + $0xf0] sm:$0xf]  ;;  %v1617_v56 = vor.u32 %v1964_v53, %v1616_v52  ;;  %v1980_v57 = vld [vmem:[#allocation6 + $0xf4] sm:$0xf0] }
  0x3c   :  { %v1744_v58 = vld [vmem:[#allocation6 + $0x170] sm:$0xf]  ;;  %v1996_v59 = vld [vmem:[#allocation6 + $0x174] sm:$0xf0]  ;;  %v1681_v60 = vor.u32 %v1980_v57, %v1680_v54  ;;  %v1592_v53 = vld [vmem:[#allocation6 + $0x40] sm:$0xf] }
  0x3d   :  { %v1745_v61 = vor.u32 %v1996_v59, %v1744_v58  ;;  %v1808_v62 = vld [vmem:[#allocation6 + $0x1f0] sm:$0xf]  ;;  %v2012_v63 = vld [vmem:[#allocation6 + $0x1f4] sm:$0xf0]  ;;  %v1958_v54 = vld [vmem:[#allocation6 + $0x44] sm:$0xf0] }
  0x3e   :  { %v1974_v57 = vld [vmem:[#allocation6 + $0xc4] sm:$0xf0]  ;;  %v1720_v58 = vld [vmem:[#allocation6 + $0x140] sm:$0xf] }
  0x3f   :  { %v1540_v0 = vld [vmem:[%s2774_s28] sm:$0xf]  ;;  %v1947_v1 = vld [vmem:[%s2774_s28 + $0xc] sm:$0xf0]  ;;  %v1945_v2 = vld [vmem:[%s2774_s28 + $0x4] sm:$0xf] }
  0x40   :  { %v1541_v3 = vor.u32 %v1947_v1, %v1540_v0  ;;  %v1542_v4 = vld [vmem:[%s2774_s28 + $0x10] sm:$0xf0]  ;;  %v1548_v5 = vld [vmem:[%s2774_s28 + $0x8] sm:$0xf]  ;;  %v1948_v6 = vld [vmem:[%s2774_s28 + $0x14] sm:$0xf0]  ;;  %v2075_v49 = vpop.eup %2074  ;;  %v1809_v1 = vor.u32 %v2012_v63, %v1808_v62 }
  0x41   :  { %v1545_v7 = vor.u32 %v1945_v2, %v1542_v4  ;;  %v1549_v8 = vor.u32 %v1948_v6, %v1548_v5  ;;  %v1946_v9 = vld [vmem:[%s2774_s28 + $0xc] sm:$0xf]  ;;  %v1550_v10 = vld [vmem:[%s2774_s28 + $0x18] sm:$0xf0]  ;;  %v1944_v11 = vld [vmem:[%s2775_s9] sm:$0xff]  ;;  %v329_v50 = vmul.f32 512.0, %v2075_v49  ;;  %vm333_vm1 = vweird.f32 %v2075_v49 }
  0x42   :  { %261 = vmatpush.bf16.msra.mxu0 %v1541_v3  ;;  %v1553_v12 = vor.u32 %v1946_v9, %v1550_v10  ;;  %v215_v13 = vld [vmem:[%s2776_s12] sm:$0xf]  ;;  %v1608_v0 = vld [vmem:[#allocation6 + $0x60] sm:$0xf]  ;;  %v1962_v2 = vld [vmem:[#allocation6 + $0x64] sm:$0xf0] }
  0x43   :  { %275 = vmatpush.bf16.msra.mxu1 %v1545_v7  ;;  %289 = vmatpush.bf16.msra.mxu2 %v1549_v8  ;;  %v217_v14 = vperm.slane %v215_v13, 0  ;;  %v218_v15 = vperm.slane %v215_v13, 1  ;;  %v219_v22 = vperm.slane %v215_v13, 2  ;;  %v220_v23 = vperm.slane %v215_v13, 3  ;;  %v1672_v3 = vld [vmem:[#allocation6 + $0xe0] sm:$0xf] }
  0x44   :  { %303 = vmatpush.bf16.msra.mxu3 %v1553_v12  ;;  %v330_v51 = vsub.f32 1.0, %v329_v50  ;;  %v1978_v4 = vld [vmem:[#allocation6 + $0xe4] sm:$0xf0]  ;;  %v1609_v5 = vor.u32 %v1962_v2, %v1608_v0  ;;  %v1736_v7 = vld [vmem:[#allocation6 + $0x160] sm:$0xf] }
  0x45   :  { %1554 = vmatmul.msk.bf16.vlgmr.msra.gmra.mxu0 %vm250_vm0, %v1944_v11  ;;  %v1673_v6 = vor.u32 %v1978_v4, %v1672_v3  ;;  %v1994_v8 = vld [vmem:[#allocation6 + $0x164] sm:$0xf0]  ;;  %v1800_v9 = vld [vmem:[#allocation6 + $0x1e0] sm:$0xf]  ;;  %v1792_v50 = vld [vmem:[#allocation6 + $0x1d0] sm:$0xf] }
  0x46   :  { %1555 = vmatmul.msk.bf16.vlgmr.msra.gmra.mxu1 %vm250_vm0, %v1944_v11  ;;  %1556 = vmatmul.msk.bf16.vlgmr.msra.gmra.mxu2 %vm250_vm0, %v1944_v11  ;;  %v331_v55 = vmul.f32 %v2075_v49, %v330_v51  ;;  %v2010_v12 = vld [vmem:[#allocation6 + $0x1e4] sm:$0xf0]  ;;  %v2008_v51 = vld [vmem:[#allocation6 + $0x1d4] sm:$0xf0]  ;;  %v1784_v62 = vld [vmem:[#allocation6 + $0x1c0] sm:$0xf] }
  0x47   :  { %1557 = vmatmul.msk.bf16.vlgmr.msra.gmra.mxu3 %vm250_vm0, %v1944_v11  ;;  %825 = vmatpush.bf16.msrb.mxu0 %v1617_v56  ;;  %v1737_v11 = vor.u32 %v1994_v8, %v1736_v7  ;;  %v1801_v13 = vor.u32 %v2010_v12, %v1800_v9  ;;  %v1793_v52 = vor.u32 %v2008_v51, %v1792_v50  ;;  %v1990_v59 = vld [vmem:[#allocation6 + $0x144] sm:$0xf0]  ;;  %v1956_v2 = vld [vmem:[#allocation6 + $0x34] sm:$0xf0]  ;;  %v1648_v3 = vld [vmem:[#allocation6 + $0xb0] sm:$0xf] }
  0x48   :  { %839 = vmatpush.bf16.msrb.mxu1 %v1681_v60  ;;  %853 = vmatpush.bf16.msrb.mxu2 %v1745_v61  ;;  %v332_v10 = vadd.f32 %v2075_v49, %v331_v55  ;;  %v1656_v55 = vld [vmem:[#allocation6 + $0xc0] sm:$0xf]  ;;  %v1593_v56 = vor.u32 %v1958_v54, %v1592_v53  ;;  %v1721_v61 = vor.u32 %v1990_v59, %v1720_v58  ;;  %v2006_v63 = vld [vmem:[#allocation6 + $0x1c4] sm:$0xf0]  ;;  %v1988_v7 = vld [vmem:[#allocation6 + $0x134] sm:$0xf0] }
  0x49   :  { %867 = vmatpush.bf16.msrb.mxu3 %v1809_v1  ;;  %v1657_v60 = vor.u32 %v1974_v57, %v1656_v55  ;;  %v1785_v0 = vor.u32 %v2006_v63, %v1784_v62  ;;  %v1584_v1 = vld [vmem:[#allocation6 + $0x30] sm:$0xf]  ;;  %v1966_v50 = vld [vmem:[#allocation6 + $0x84] sm:$0xf0]  ;;  %v1688_v51 = vld [vmem:[#allocation6 + $0x100] sm:$0xf] }
  0x4a   :  { %v1585_v4 = vor.u32 %v1956_v2, %v1584_v1  ;;  %v1752_v55 = vld [vmem:[#allocation6 + $0x180] sm:$0xf]  ;;  %v1963_v57 = vld [vmem:[#allocation6 + $0x74] sm:$0xf]  ;;  %v1618_v59 = vld [vmem:[#allocation6 + $0x78] sm:$0xf0] }
  0x4b   :  { %826 = vmatpush.bf16.msrb.mxu0 %v1609_v5  ;;  %v1972_v5 = vld [vmem:[#allocation6 + $0xb4] sm:$0xf0]  ;;  %v1621_v62 = vor.u32 %v1963_v57, %v1618_v59  ;;  %v1746_v1 = vld [vmem:[#allocation6 + $0x178] sm:$0xf0]  ;;  %v2011_v2 = vld [vmem:[#allocation6 + $0x1f4] sm:$0xf] }
  0x4c   :  { %840 = vmatpush.bf16.msrb.mxu1 %v1673_v6  ;;  %854 = vmatpush.bf16.msrb.mxu2 %v1737_v11  ;;  %v1712_v6 = vld [vmem:[#allocation6 + $0x130] sm:$0xf]  ;;  %v1649_v8 = vor.u32 %v1972_v5, %v1648_v3  ;;  %v2004_v11 = vld [vmem:[#allocation6 + $0x1b4] sm:$0xf0]  ;;  %v1961_v5 = vld [vmem:[#allocation6 + $0x64] sm:$0xf] }
  0x4d   :  { %868 = vmatpush.bf16.msrb.mxu3 %v1801_v13  ;;  %v1713_v9 = vor.u32 %v1988_v7, %v1712_v6  ;;  %v1576_v13 = vld [vmem:[#allocation6 + $0x20] sm:$0xf]  ;;  %v1610_v6 = vld [vmem:[#allocation6 + $0x68] sm:$0xf0]  ;;  %v1971_v57 = vld [vmem:[#allocation6 + $0xb4] sm:$0xf] }
  0x4e   :  { %v1987_v59 = vld [vmem:[#allocation6 + $0x134] sm:$0xf] }
  0x51   :  { %869 = vmatpush.bf16.msrb.mxu3 %v1793_v52  ;;  %v1982_v52 = vld [vmem:[#allocation6 + $0x104] sm:$0xf0] }
  0x52   :  { %v1689_v54 = vor.u32 %v1982_v52, %v1688_v51  ;;  %v1786_v51 = vld [vmem:[#allocation6 + $0x1c8] sm:$0xf0] }
  0x55   :  { %870 = vmatpush.bf16.msrb.mxu3 %v1785_v0  ;;  %v1995_v0 = vld [vmem:[#allocation6 + $0x174] sm:$0xf] }
  0x56   :  { %v1749_v3 = vor.u32 %v1995_v0, %v1746_v1  ;;  %v1778_v0 = vld [vmem:[#allocation6 + $0x1b8] sm:$0xf0] }
  0xc2   :  { %v263_v16 = vpop.f32.mrf.mxu0 }
  0xc3   :  { %v2539_v17 = vadd.f32 %v263_v16, %v217_v14  ;;  %v277_v18 = vpop.f32.mrf.mxu1 }
  0xc4   :  { %v2541_v19 = vadd.f32 %v277_v18, %v218_v15 }
  0xc5   :  { %v310_v20 = vmax.f32 %v2539_v17, 0.0 }
  0xc6   :  { %v311_v21 = vmax.f32 %v2541_v19, 0.0 }
  0xc8   :  { %v318_v25 = vadd.f32 %v311_v21, %v310_v20 }
  0xc9   :  { %v291_v24 = vpop.f32.mrf.mxu2 }
  0xca   :  { %v2549_v26 = vadd.f32 %v291_v24, %v219_v22  ;;  %v305_v27 = vpop.f32.mrf.mxu3  ;;  %v265_v28 = vpop.f32.mrf.mxu0 }
  0xcb   :  { %v2551_v29 = vadd.f32 %v305_v27, %v220_v23  ;;  %v279_v30 = vpop.f32.mrf.mxu1  ;;  %v2554_v32 = vadd.f32 %v265_v28, %v217_v14  ;;  %v2577_v14 = vsel %vm333_vm1, %v2075_v49, %v332_v10  ;;  %v1776_v10 = vld [vmem:[#allocation6 + $0x1b0] sm:$0xf] }
  0xcc   :  { %v312_v31 = vmax.f32 %v2549_v26, 0.0  ;;  %v2556_v33 = vadd.f32 %v279_v30, %v218_v15  ;;  %v1777_v12 = vor.u32 %v2004_v11, %v1776_v10  ;;  %v1674_v10 = vld [vmem:[#allocation6 + $0xe8] sm:$0xf0]  ;;  %v1993_v11 = vld [vmem:[#allocation6 + $0x164] sm:$0xf] }
  0xcd   :  { %v313_v34 = vmax.f32 %v2551_v29, 0.0  ;;  %v314_v36 = vmax.f32 %v2554_v32, 0.0 }
  0xce   :  { %v319_v35 = vadd.f32 %v318_v25, %v312_v31  ;;  %v315_v37 = vmax.f32 %v2556_v33, 0.0  ;;  %871 = vmatpush.bf16.msrb.mxu3 %v1777_v12 }
  0xd0   :  { %v320_v38 = vadd.f32 %v319_v35, %v313_v34  ;;  %v323_v43 = vadd.f32 %v315_v37, %v314_v36 }
  0xd1   :  { %v293_v39 = vpop.f32.mrf.mxu2 }
  0xd2   :  { %v2563_v40 = vadd.f32 %v293_v39, %v219_v22  ;;  %v307_v41 = vpop.f32.mrf.mxu3  ;;  %321 = vadd.xlane.f32.xlu0 %v320_v38 }
  0xd3   :  { %v2565_v42 = vadd.f32 %v307_v41, %v220_v23  ;;  %v1600_v41 = vld [vmem:[#allocation6 + $0x50] sm:$0xf] }
  0xd4   :  { %v316_v44 = vmax.f32 %v2563_v40, 0.0 }
  0xd5   :  { %v317_v46 = vmax.f32 %v2565_v42, 0.0  ;;  %v1960_v42 = vld [vmem:[#allocation6 + $0x54] sm:$0xf0] }
  0xd6   :  { %v324_v45 = vadd.f32 %v323_v43, %v316_v44  ;;  %v1664_v43 = vld [vmem:[#allocation6 + $0xd0] sm:$0xf] }
  0xd8   :  { %v325_v47 = vadd.f32 %v324_v45, %v317_v46  ;;  %v1976_v45 = vld [vmem:[#allocation6 + $0xd4] sm:$0xf0] }
  0xd9   :  { %v1665_v48 = vor.u32 %v1976_v45, %v1664_v43  ;;  %v1760_v43 = vld [vmem:[#allocation6 + $0x190] sm:$0xf] }
  0xda   :  { %326 = vadd.xlane.f32.xlu0 %v325_v47  ;;  %v1992_v47 = vld [vmem:[#allocation6 + $0x154] sm:$0xf0] }
  0xdb   :  { %841 = vmatpush.bf16.msrb.mxu1 %v1665_v48  ;;  %v1624_v48 = vld [vmem:[#allocation6 + $0x80] sm:$0xf] }
  0xdc   :  { %v1625_v53 = vor.u32 %v1966_v50, %v1624_v48 }
  0xdf   :  { %842 = vmatpush.bf16.msrb.mxu1 %v1657_v60  ;;  %v1979_v60 = vld [vmem:[#allocation6 + $0xf4] sm:$0xf] }
  0xe3   :  { %843 = vmatpush.bf16.msrb.mxu1 %v1649_v8  ;;  %v1613_v8 = vor.u32 %v1961_v5, %v1610_v6  ;;  %v1578_v5 = vld [vmem:[#allocation6 + $0x28] sm:$0xf0]  ;;  %v1969_v6 = vld [vmem:[#allocation6 + $0xa4] sm:$0xf] }
 0x145   :  { %v322_v15 = vpop.xlane.xlu0 %321 }
 0x146   :  { %v335_v16 = vmul.f32 %v2577_v14, %v322_v15  ;;  %v1954_v15 = vld [vmem:[#allocation6 + $0x24] sm:$0xf0] }
 0x148   :  { %v2582_v18 = vsub.f32 %v310_v20, %v335_v16  ;;  %v2586_v22 = vsub.f32 %v311_v21, %v335_v16  ;;  %v2590_v23 = vsub.f32 %v312_v31, %v335_v16  ;;  %v2592_v24 = vsub.f32 %v313_v34, %v335_v16  ;;  %v1640_v16 = vld [vmem:[#allocation6 + $0xa0] sm:$0xf] }
 0x14a   :  { %v345_v25 = vmul.f32 %v2582_v18, %v2582_v18  ;;  %v346_v27 = vmul.f32 %v2586_v22, %v2586_v22  ;;  %v347_v17 = vmul.f32 %v2590_v23, %v2590_v23  ;;  %v348_v21 = vmul.f32 %v2592_v24, %v2592_v24 }
 0x14c   :  { %v353_v20 = vadd.f32 %v346_v27, %v345_v25  ;;  %v1577_v25 = vor.u32 %v1954_v15, %v1576_v13  ;;  %v1970_v27 = vld [vmem:[#allocation6 + $0xa4] sm:$0xf0]  ;;  %v1738_v13 = vld [vmem:[#allocation6 + $0x168] sm:$0xf0]  ;;  %v2009_v15 = vld [vmem:[#allocation6 + $0x1e4] sm:$0xf] }
 0x14d   :  { %v327_v28 = vpop.xlane.xlu0 %326 }
 0x14e   :  { %v336_v19 = vmul.f32 %v2577_v14, %v327_v28  ;;  %v354_v26 = vadd.f32 %v353_v20, %v347_v17  ;;  %v1704_v17 = vld [vmem:[#allocation6 + $0x120] sm:$0xf]  ;;  %v1986_v20 = vld [vmem:[#allocation6 + $0x124] sm:$0xf0]  ;;  %v1641_v28 = vor.u32 %v1970_v27, %v1640_v16  ;;  %v1802_v16 = vld [vmem:[#allocation6 + $0x1e8] sm:$0xf0] }
 0x14f   :  { %v1805_v27 = vor.u32 %v2009_v15, %v1802_v16  ;;  %v2001_v15 = vld [vmem:[#allocation6 + $0x1a4] sm:$0xf]  ;;  %v1770_v16 = vld [vmem:[#allocation6 + $0x1a8] sm:$0xf0] }
 0x150   :  { %v2605_v29 = vsub.f32 %v314_v36, %v336_v19  ;;  %v2609_v30 = vsub.f32 %v315_v37, %v336_v19  ;;  %v355_v31 = vadd.f32 %v354_v26, %v348_v21  ;;  %v2613_v34 = vsub.f32 %v316_v44, %v336_v19  ;;  %v1768_v21 = vld [vmem:[#allocation6 + $0x1a0] sm:$0xf]  ;;  %v2002_v26 = vld [vmem:[#allocation6 + $0x1a4] sm:$0xf0]  ;;  %844 = vmatpush.bf16.msrb.mxu1 %v1641_v28  ;;  %v1975_v28 = vld [vmem:[#allocation6 + $0xd4] sm:$0xf] }
 0x151   :  { %v2617_v35 = vsub.f32 %v317_v46, %v336_v19  ;;  %v1601_v44 = vor.u32 %v1960_v42, %v1600_v41  ;;  %v1728_v46 = vld [vmem:[#allocation6 + $0x150] sm:$0xf]  ;;  %v1705_v19 = vor.u32 %v1986_v20, %v1704_v17  ;;  %v1959_v17 = vld [vmem:[#allocation6 + $0x54] sm:$0xf]  ;;  %v1602_v20 = vld [vmem:[#allocation6 + $0x58] sm:$0xf0] }
 0x152   :  { %356 = vadd.xlane.f32.xlu1 %v355_v31  ;;  %v349_v38 = vmul.f32 %v2605_v29, %v2605_v29  ;;  %v350_v32 = vmul.f32 %v2609_v30, %v2609_v30  ;;  %v351_v33 = vmul.f32 %v2613_v34, %v2613_v34  ;;  %v1729_v49 = vor.u32 %v1992_v47, %v1728_v46  ;;  %v1560_v46 = vld [vmem:[#allocation6] sm:$0xf]  ;;  %v1950_v47 = vld [vmem:[#allocation6 + $0x4] sm:$0xf0] }
 0x153   :  { %v352_v37 = vmul.f32 %v2617_v35, %v2617_v35  ;;  %827 = vmatpush.bf16.msrb.mxu0 %v1601_v44  ;;  %v1769_v31 = vor.u32 %v2002_v26, %v1768_v21  ;;  %v2000_v44 = vld [vmem:[#allocation6 + $0x194] sm:$0xf0]  ;;  %v1666_v21 = vld [vmem:[#allocation6 + $0xd8] sm:$0xf0]  ;;  %v1991_v26 = vld [vmem:[#allocation6 + $0x154] sm:$0xf] }
 0x154   :  { %v358_v36 = vadd.f32 %v350_v32, %v349_v38  ;;  %855 = vmatpush.bf16.msrb.mxu2 %v1729_v49  ;;  %v1568_v38 = vld [vmem:[#allocation6 + $0x10] sm:$0xf]  ;;  %v1952_v32 = vld [vmem:[#allocation6 + $0x14] sm:$0xf0]  ;;  %v1761_v45 = vor.u32 %v2000_v44, %v1760_v43  ;;  %v1561_v49 = vor.u32 %v1950_v47, %v1560_v46  ;;  %v1973_v43 = vld [vmem:[#allocation6 + $0xc4] sm:$0xf] }
 0x155   :  { %872 = vmatpush.bf16.msrb.mxu3 %v1769_v31  ;;  %v1730_v31 = vld [vmem:[#allocation6 + $0x158] sm:$0xf0]  ;;  %v1658_v44 = vld [vmem:[#allocation6 + $0xc8] sm:$0xf0]  ;;  %v2005_v47 = vld [vmem:[#allocation6 + $0x1c4] sm:$0xf] }
 0x156   :  { %v359_v39 = vadd.f32 %v358_v36, %v351_v33  ;;  %v1632_v33 = vld [vmem:[#allocation6 + $0x90] sm:$0xf]  ;;  %v1569_v36 = vor.u32 %v1952_v32, %v1568_v38  ;;  %v1669_v32 = vor.u32 %v1975_v28, %v1666_v21  ;;  %v1722_v46 = vld [vmem:[#allocation6 + $0x148] sm:$0xf0]  ;;  %v1661_v50 = vor.u32 %v1973_v43, %v1658_v44  ;;  %v1983_v21 = vld [vmem:[#allocation6 + $0x114] sm:$0xf] }
 0x157   :  { %828 = vmatpush.bf16.msrb.mxu0 %v1593_v56  ;;  %v1998_v56 = vld [vmem:[#allocation6 + $0x184] sm:$0xf0]  ;;  %v1773_v28 = vor.u32 %v2001_v15, %v1770_v16  ;;  %v1965_v43 = vld [vmem:[#allocation6 + $0x84] sm:$0xf] }
 0x158   :  { %v360_v40 = vadd.f32 %v359_v39, %v352_v37  ;;  %856 = vmatpush.bf16.msrb.mxu2 %v1721_v61  ;;  %v1968_v37 = vld [vmem:[#allocation6 + $0x94] sm:$0xf0]  ;;  %v1696_v39 = vld [vmem:[#allocation6 + $0x110] sm:$0xf]  ;;  %v1753_v58 = vor.u32 %v1998_v56, %v1752_v55  ;;  %v1682_v61 = vld [vmem:[#allocation6 + $0xf8] sm:$0xf0] }
 0x159   :  { %v1633_v41 = vor.u32 %v1968_v37, %v1632_v33  ;;  %873 = vmatpush.bf16.msrb.mxu3 %v1761_v45  ;;  %v1685_v63 = vor.u32 %v1979_v60, %v1682_v61  ;;  %v1733_v33 = vor.u32 %v1991_v26, %v1730_v31  ;;  %v1794_v37 = vld [vmem:[#allocation6 + $0x1d8] sm:$0xf0]  ;;  %v1989_v45 = vld [vmem:[#allocation6 + $0x144] sm:$0xf] }
 0x15a   :  { %361 = vadd.xlane.f32.xlu1 %v360_v40  ;;  %v1984_v40 = vld [vmem:[#allocation6 + $0x114] sm:$0xf0]  ;;  %v1725_v52 = vor.u32 %v1989_v45, %v1722_v46  ;;  %v1586_v55 = vld [vmem:[#allocation6 + $0x38] sm:$0xf0]  ;;  %v1626_v45 = vld [vmem:[#allocation6 + $0x88] sm:$0xf0] }
 0x15b   :  { %829 = vmatpush.bf16.msrb.mxu0 %v1585_v4  ;;  %v1697_v42 = vor.u32 %v1984_v40, %v1696_v39  ;;  %845 = vmatpush.bf16.msrb.mxu1 %v1633_v41  ;;  %v1810_v4 = vld [vmem:[#allocation6 + $0x1f8] sm:$0xf0]  ;;  %v1957_v39 = vld [vmem:[#allocation6 + $0x44] sm:$0xf] }
 0x15c   :  { %857 = vmatpush.bf16.msrb.mxu2 %v1713_v9  ;;  %v1813_v7 = vor.u32 %v2011_v2, %v1810_v4  ;;  %v1977_v9 = vld [vmem:[#allocation6 + $0xe4] sm:$0xf]  ;;  %v1698_v31 = vld [vmem:[#allocation6 + $0x118] sm:$0xf0] }
 0x15d   :  { %874 = vmatpush.bf16.msrb.mxu3 %v1753_v58  ;;  %v1677_v12 = vor.u32 %v1977_v9, %v1674_v10  ;;  %v1650_v58 = vld [vmem:[#allocation6 + $0xb8] sm:$0xf0]  ;;  %v1953_v4 = vld [vmem:[#allocation6 + $0x24] sm:$0xf]  ;;  %v1706_v9 = vld [vmem:[#allocation6 + $0x128] sm:$0xf0] }
 0x15e   :  { %v1653_v61 = vor.u32 %v1971_v57, %v1650_v58  ;;  %v1981_v46 = vld [vmem:[#allocation6 + $0x104] sm:$0xf] }
 0x15f   :  { %830 = vmatpush.bf16.msrb.mxu0 %v1577_v25  ;;  %846 = vmatpush.bf16.msrb.mxu1 %v1625_v53  ;;  %v1741_v25 = vor.u32 %v1993_v11, %v1738_v13  ;;  %v1789_v53 = vor.u32 %v2005_v47, %v1786_v51  ;;  %v1690_v47 = vld [vmem:[#allocation6 + $0x108] sm:$0xf0] }
 0x160   :  { %858 = vmatpush.bf16.msrb.mxu2 %v1705_v19  ;;  %v1605_v19 = vor.u32 %v1959_v17, %v1602_v20  ;;  %v1570_v17 = vld [vmem:[#allocation6 + $0x18] sm:$0xf0]  ;;  %v1967_v20 = vld [vmem:[#allocation6 + $0x94] sm:$0xf]  ;;  %v1754_v51 = vld [vmem:[#allocation6 + $0x188] sm:$0xf0]  ;;  %v1693_v57 = vor.u32 %v1981_v46, %v1690_v47 }
 0x161   :  { %923 = vmatpush.bf16.msra.mxu3 %v1813_v7  ;;  %v1642_v7 = vld [vmem:[#allocation6 + $0xa8] sm:$0xf0] }
 0x162   :  { %v1645_v13 = vor.u32 %v1969_v6, %v1642_v7 }
 0x163   :  { %831 = vmatpush.bf16.msrb.mxu0 %v1569_v36  ;;  %895 = vmatpush.bf16.msra.mxu1 %v1685_v63  ;;  %v2007_v36 = vld [vmem:[#allocation6 + $0x1d4] sm:$0xf] }
 0x164   :  { %859 = vmatpush.bf16.msrb.mxu2 %v1697_v42  ;;  %v1797_v41 = vor.u32 %v2007_v36, %v1794_v37  ;;  %v1594_v42 = vld [vmem:[#allocation6 + $0x48] sm:$0xf0]  ;;  %v2003_v63 = vld [vmem:[#allocation6 + $0x1b4] sm:$0xf]  ;;  %v1949_v37 = vld [vmem:[#allocation6 + $0x4] sm:$0xf] }
 0x165   :  { %924 = vmatpush.bf16.msra.mxu3 %v1805_v27  ;;  %v1951_v27 = vld [vmem:[#allocation6 + $0x14] sm:$0xf] }
 0x167   :  { %832 = vmatpush.bf16.msrb.mxu0 %v1561_v49  ;;  %896 = vmatpush.bf16.msra.mxu1 %v1677_v12  ;;  %v1597_v49 = vor.u32 %v1957_v39, %v1594_v42  ;;  %v1581_v12 = vor.u32 %v1953_v4, %v1578_v5  ;;  %v1562_v42 = vld [vmem:[#allocation6 + $0x8] sm:$0xf0] }
 0x168   :  { %860 = vmatpush.bf16.msrb.mxu2 %v1689_v54  ;;  %v1955_v54 = vld [vmem:[#allocation6 + $0x34] sm:$0xf] }
 0x169   :  { %925 = vmatpush.bf16.msra.mxu3 %v1797_v41  ;;  %v1589_v56 = vor.u32 %v1955_v54, %v1586_v55  ;;  %v1701_v41 = vor.u32 %v1983_v21, %v1698_v31 }
 0x16b   :  { %881 = vmatpush.bf16.msra.mxu0 %v1621_v62  ;;  %897 = vmatpush.bf16.msra.mxu1 %v1669_v32  ;;  %v1714_v62 = vld [vmem:[#allocation6 + $0x138] sm:$0xf0] }
 0x16c   :  { %909 = vmatpush.bf16.msra.mxu2 %v1749_v3  ;;  %v1717_v2 = vor.u32 %v1987_v59, %v1714_v62  ;;  %v1781_v3 = vor.u32 %v2003_v63, %v1778_v0  ;;  %v1762_v32 = vld [vmem:[#allocation6 + $0x198] sm:$0xf0] }
 0x16d   :  { %926 = vmatpush.bf16.msra.mxu3 %v1789_v53  ;;  %v1565_v53 = vor.u32 %v1949_v37, %v1562_v42 }
 0x16f   :  { %882 = vmatpush.bf16.msra.mxu0 %v1613_v8  ;;  %898 = vmatpush.bf16.msra.mxu1 %v1661_v50  ;;  %v1985_v8 = vld [vmem:[#allocation6 + $0x124] sm:$0xf] }
 0x170   :  { %910 = vmatpush.bf16.msra.mxu2 %v1741_v25  ;;  %v1709_v25 = vor.u32 %v1985_v8, %v1706_v9  ;;  %v1997_v50 = vld [vmem:[#allocation6 + $0x184] sm:$0xf] }
 0x171   :  { %927 = vmatpush.bf16.msra.mxu3 %v1781_v3 }
 0x173   :  { %883 = vmatpush.bf16.msra.mxu0 %v1605_v19  ;;  %899 = vmatpush.bf16.msra.mxu1 %v1653_v61  ;;  %v1634_v19 = vld [vmem:[#allocation6 + $0x98] sm:$0xf0] }
 0x174   :  { %911 = vmatpush.bf16.msra.mxu2 %v1733_v33  ;;  %v1573_v33 = vor.u32 %v1951_v27, %v1570_v17  ;;  %v1637_v36 = vor.u32 %v1967_v20, %v1634_v19 }
 0x175   :  { %928 = vmatpush.bf16.msra.mxu3 %v1773_v28 }
 0x177   :  { %884 = vmatpush.bf16.msra.mxu0 %v1597_v49  ;;  %900 = vmatpush.bf16.msra.mxu1 %v1645_v13 }
 0x178   :  { %912 = vmatpush.bf16.msra.mxu2 %v1725_v52 }
 0x17b   :  { %885 = vmatpush.bf16.msra.mxu0 %v1589_v56  ;;  %901 = vmatpush.bf16.msra.mxu1 %v1637_v36  ;;  %v1629_v56 = vor.u32 %v1965_v43, %v1626_v45 }
 0x17c   :  { %913 = vmatpush.bf16.msra.mxu2 %v1717_v2  ;;  %v413_v2 = vld [vmem:[#allocation4] sm:$0xf] }
 0x17d   :  { %v415_v8 = vperm.slane %v413_v2, 0  ;;  %v418_v13 = vperm.slane %v413_v2, 3 }
 0x17f   :  { %886 = vmatpush.bf16.msra.mxu0 %v1581_v12  ;;  %902 = vmatpush.bf16.msra.mxu1 %v1629_v56  ;;  %v417_v12 = vperm.slane %v413_v2, 2 }
 0x180   :  { %914 = vmatpush.bf16.msra.mxu2 %v1709_v25 }
 0x183   :  { %887 = vmatpush.bf16.msra.mxu0 %v1573_v33 }
 0x184   :  { %915 = vmatpush.bf16.msra.mxu2 %v1701_v41 }
 0x187   :  { %888 = vmatpush.bf16.msra.mxu0 %v1565_v53 }
 0x188   :  { %916 = vmatpush.bf16.msra.mxu2 %v1693_v57 }
 0x1c5   :  { %v357_v38 = vpop.xlane.xlu1 %356 }
 0x1c6   :  { %v363_v40 = vmul.f32 %v357_v38, %v2577_v14  ;;  %v1999_v38 = vld [vmem:[#allocation6 + $0x194] sm:$0xf] }
 0x1c7   :  { %v1765_v44 = vor.u32 %v1999_v38, %v1762_v32 }
 0x1c8   :  { %v2628_v48 = vadd.f32 1e-05, %v363_v40  ;;  %v387_v40 = vld [vmem:[#allocation2] sm:$0xf] }
 0x1c9   :  { %v389_v58 = vperm.slane %v387_v40, 0  ;;  %v390_v59 = vperm.slane %v387_v40, 1  ;;  %929 = vmatpush.bf16.msra.mxu3 %v1765_v44  ;;  %v391_v63 = vperm.slane %v387_v40, 2  ;;  %v392_v0 = vperm.slane %v387_v40, 3 }
 0x1ca   :  { %2076 = vrsqrt.f32 %v2628_v48  ;;  %vm373_vm3 = vweird.f32 %v2628_v48 }
 0x1cd   :  { %v362_v60 = vpop.xlane.xlu1 %361 }
 0x1ce   :  { %v364_v1 = vmul.f32 %v362_v60, %v2577_v14  ;;  %v1757_v60 = vor.u32 %v1997_v50, %v1754_v51 }
 0x1d0   :  { %v2077_v10 = vpop.eup %2076  ;;  %v2632_v11 = vadd.f32 1e-05, %v364_v1  ;;  %930 = vmatpush.bf16.msra.mxu3 %v1757_v60 }
 0x1d1   :  { %v368_v14 = vmul.f32 %v2077_v10, %v2628_v48  ;;  %vm374_vm2 = vweird.f32 %v2077_v10 }
 0x1d2   :  { %2078 = vrsqrt.f32 %v2632_v11  ;;  %vm375_vm4 = vmor %vm373_vm3, %vm374_vm2  ;;  %vm383_vm6 = vweird.f32 %v2632_v11 }
 0x1d3   :  { %v369_v26 = vmul.f32 %v2077_v10, %v368_v14 }
 0x1d5   :  { %v370_v39 = vmul.f32 0.5, %v369_v26 }
 0x1d7   :  { %v371_v49 = vsub.f32 1.5, %v370_v39 }
 0x1d8   :  { %v2079_v52 = vpop.eup %2078 }
 0x1d9   :  { %v372_v54 = vmul.f32 %v2077_v10, %v371_v49  ;;  %v378_v55 = vmul.f32 %v2079_v52, %v2632_v11  ;;  %vm384_vm5 = vweird.f32 %v2079_v52 }
 0x1da   :  { %vm385_vm7 = vmor %vm383_vm6, %vm384_vm5  ;;  %vm1326_vm6 = vcmask 523264  }
 0x1db   :  { %v376_v61 = vsel %vm375_vm4, %v2077_v10, %v372_v54  ;;  %v379_v62 = vmul.f32 %v2079_v52, %v378_v55  ;;  %v416_v10 = vperm.slane %v413_v2, 1 }
 0x1dc   :  { %v397_v1 = vmul.f32 %v389_v58, %v376_v61  ;;  %v398_v4 = vmul.f32 %v390_v59, %v376_v61  ;;  %v399_v5 = vmul.f32 %v391_v63, %v376_v61  ;;  %v400_v6 = vmul.f32 %v392_v0, %v376_v61 }
 0x1dd   :  { %v380_v48 = vmul.f32 0.5, %v379_v62 }
 0x1de   :  { %v405_v9 = vmul.f32 %v397_v1, %v2582_v18  ;;  %v406_v16 = vmul.f32 %v398_v4, %v2586_v22  ;;  %v407_v14 = vmul.f32 %v399_v5, %v2590_v23  ;;  %v408_v25 = vmul.f32 %v400_v6, %v2592_v24 }
 0x1df   :  { %v381_v3 = vsub.f32 1.5, %v380_v48 }
 0x1e0   :  { %v423_v26 = vadd.f32 %v415_v8, %v405_v9  ;;  %v424_v31 = vadd.f32 %v416_v10, %v406_v16  ;;  %v425_v38 = vadd.f32 %v417_v12, %v407_v14  ;;  %v426_v22 = vadd.f32 %v418_v13, %v408_v25 }
 0x1e1   :  { %v382_v7 = vmul.f32 %v2079_v52, %v381_v3  ;;  %v2365_v16 = vmov 256.0  }
 0x1e2   :  { %2080 = vrcp.f32 %v2365_v16 }
 0x1e3   :  { %v386_v15 = vsel %vm385_vm7, %v2079_v52, %v382_v7 }
 0x1e4   :  { %v401_v27 = vmul.f32 %v389_v58, %v386_v15  ;;  %v402_v17 = vmul.f32 %v390_v59, %v386_v15  ;;  %v403_v20 = vmul.f32 %v391_v63, %v386_v15  ;;  %v404_v28 = vmul.f32 %v392_v0, %v386_v15 }
 0x1e6   :  { %v409_v11 = vmul.f32 %v401_v27, %v2605_v29  ;;  %v410_v19 = vmul.f32 %v402_v17, %v2609_v30  ;;  %v411_v18 = vmul.f32 %v403_v20, %v2613_v34  ;;  %v412_v21 = vmul.f32 %v404_v28, %v2617_v35  ;;  %v499_v34 = vld [vmem:[#allocation7] sm:$0x3] }
 0x1e7   :  { %v501_v44 = vperm.slane %v499_v34, 0  ;;  %v502_v46 = vperm.slane %v499_v34, 1  ;;  %v2018_v34 = vld [vmem:[#allocation12 + $0x28] sm:$0xff] }
 0x1e8   :  { %v427_v32 = vadd.f32 %v415_v8, %v409_v11  ;;  %v428_v23 = vadd.f32 %v416_v10, %v410_v19  ;;  %v429_v33 = vadd.f32 %v417_v12, %v411_v18  ;;  %v430_v24 = vadd.f32 %v418_v13, %v412_v21  ;;  %v2081_v14 = vpop.eup %2080 }
 0x1e9   :  { %v948_v25 = vmul.f32 256.0, %v2081_v14  ;;  %vm952_vm8 = vweird.f32 %v2081_v14 }
 0x1ea   :  { %v431_v36 = vpack.c.bf16 %v427_v32, %v423_v26  ;;  %v432_v37 = vpack.c.bf16 %v428_v23, %v424_v31  ;;  %v433_v39 = vpack.c.bf16 %v429_v33, %v425_v38  ;;  %v434_v40 = vpack.c.bf16 %v430_v24, %v426_v22 }
 0x1eb   :  { %v949_v27 = vsub.f32 1.0, %v948_v25 }
 0x1ec   :  { %833 = vmatmul.bf16.vlgmr.msrb.gmra.mxu0 %v431_v36  ;;  %847 = vmatmul.bf16.vlgmr.msrb.gmra.mxu1 %v432_v37 }
 0x1ed   :  { %861 = vmatmul.bf16.vlgmr.msrb.gmra.mxu2 %v433_v39  ;;  %875 = vmatmul.bf16.vlgmr.msrb.gmra.mxu3 %v434_v40  ;;  %v950_v17 = vmul.f32 %v2081_v14, %v949_v27 }
 0x1ef   :  { %v951_v20 = vadd.f32 %v2081_v14, %v950_v17 }
 0x1f1   :  { %v953_v28 = vsel %vm952_vm8, %v2081_v14, %v951_v20 }
 0x1fc   :  { %889 = vmatmul.bf16.vlgmr.msra.gmra.mxu0 %v431_v36  ;;  %903 = vmatmul.bf16.vlgmr.msra.gmra.mxu1 %v432_v37 }
 0x1fd   :  { %917 = vmatmul.bf16.vlgmr.msra.gmra.mxu2 %v433_v39  ;;  %931 = vmatmul.bf16.vlgmr.msra.gmra.mxu3 %v434_v40  ;;  %v2020_v39 = vld [vmem:[#allocation12 + $0x38] sm:$0xff] }
 0x1fe   :  { %v2028_v40 = vld [vmem:[#allocation12 + $0x78] sm:$0xff]  ;;  %1152 = vmatpush.bf16.msrb.mxu0 %v2020_v39 }
 0x1ff   :  { %1166 = vmatpush.bf16.msrb.mxu1 %v2028_v40 }
 0x269   :  { %v834_v29 = vpop.f32.mrf.mxu0  ;;  %v848_v30 = vpop.f32.mrf.mxu1 }
 0x26a   :  { %v835_v45 = vadd.f32 %v834_v29, %v501_v44  ;;  %v2019_v29 = vld [vmem:[#allocation12 + $0x30] sm:$0xff] }
 0x26b   :  { %1153 = vmatpush.bf16.msrb.mxu0 %v2019_v29 }
 0x26c   :  { %v849_v51 = vadd.f32 %v848_v30, %v835_v45  ;;  %v2027_v30 = vld [vmem:[#allocation12 + $0x70] sm:$0xff] }
 0x26d   :  { %1167 = vmatpush.bf16.msrb.mxu1 %v2027_v30  ;;  %v2015_v45 = vld [vmem:[#allocation12 + $0x10] sm:$0xff]  ;;  %v2366_v30 = vmov 128.0  }
 0x26f   :  { %1154 = vmatpush.bf16.msrb.mxu0 %v2018_v34 }
 0x270   :  { %v862_v35 = vpop.f32.mrf.mxu2  ;;  %v876_v41 = vpop.f32.mrf.mxu3 }
 0x271   :  { %v836_v42 = vpop.f32.mrf.mxu0  ;;  %v850_v43 = vpop.f32.mrf.mxu1  ;;  %v863_v54 = vadd.f32 %v862_v35, %v849_v51  ;;  %v2026_v35 = vld [vmem:[#allocation12 + $0x68] sm:$0xff]  ;;  %v2013_v51 = vld [vmem:[#allocation12] sm:$0xff] }
 0x272   :  { %v837_v55 = vadd.f32 %v836_v42, %v501_v44  ;;  %1168 = vmatpush.bf16.msrb.mxu1 %v2026_v35  ;;  %v2025_v42 = vld [vmem:[#allocation12 + $0x60] sm:$0xff]  ;;  %v2024_v44 = vld [vmem:[#allocation12 + $0x58] sm:$0xff] }
 0x273   :  { %v877_v59 = vadd.f32 %v876_v41, %v863_v54  ;;  %v2017_v41 = vld [vmem:[#allocation12 + $0x20] sm:$0xff] }
 0x274   :  { %v851_v62 = vadd.f32 %v850_v43, %v837_v55  ;;  %1155 = vmatpush.bf16.msrb.mxu0 %v2017_v41  ;;  %v2016_v43 = vld [vmem:[#allocation12 + $0x18] sm:$0xff] }
 0x275   :  { %v937_v48 = vmax.f32 %v877_v59, 0.0 }
 0x276   :  { %1169 = vmatpush.bf16.msrb.mxu1 %v2025_v42 }
 0x278   :  { %v864_v47 = vpop.f32.mrf.mxu2  ;;  %v878_v49 = vpop.f32.mrf.mxu3  ;;  %1156 = vmatpush.bf16.msrb.mxu0 %v2016_v43 }
 0x279   :  { %v890_v50 = vpop.f32.mrf.mxu0  ;;  %v904_v53 = vpop.f32.mrf.mxu1  ;;  %v865_v1 = vadd.f32 %v864_v47, %v851_v62  ;;  %v2014_v47 = vld [vmem:[#allocation12 + $0x8] sm:$0xff] }
 0x27a   :  { %v891_v52 = vadd.f32 %v890_v50, %v502_v46  ;;  %1170 = vmatpush.bf16.msrb.mxu1 %v2024_v44 }
 0x27b   :  { %v879_v7 = vadd.f32 %v878_v49, %v865_v1  ;;  %v2022_v49 = vld [vmem:[#allocation12 + $0x48] sm:$0xff] }
 0x27c   :  { %v905_v56 = vadd.f32 %v904_v53, %v891_v52  ;;  %1157 = vmatpush.bf16.msrb.mxu0 %v2015_v45  ;;  %v2021_v52 = vld [vmem:[#allocation12 + $0x40] sm:$0xff] }
 0x27d   :  { %v939_v12 = vmax.f32 %v879_v7, 0.0 }
 0x280   :  { %v918_v57 = vpop.f32.mrf.mxu2  ;;  %v932_v58 = vpop.f32.mrf.mxu3  ;;  %1158 = vmatpush.bf16.msrb.mxu0 %v2014_v47 }
 0x281   :  { %v919_v60 = vadd.f32 %v918_v57, %v905_v56  ;;  %v892_v61 = vpop.f32.mrf.mxu0  ;;  %v906_v3 = vpop.f32.mrf.mxu1 }
 0x282   :  { %v893_v0 = vadd.f32 %v892_v61, %v502_v46  ;;  %v2023_v46 = vld [vmem:[#allocation12 + $0x50] sm:$0xff] }
 0x283   :  { %v933_v63 = vadd.f32 %v932_v58, %v919_v60  ;;  %1171 = vmatpush.bf16.msrb.mxu1 %v2023_v46 }
 0x284   :  { %v907_v4 = vadd.f32 %v906_v3, %v893_v0  ;;  %1159 = vmatpush.bf16.msrb.mxu0 %v2013_v51  ;;  %v994_v0 = vld [vmem:[#allocation9] sm:$0x3] }
 0x285   :  { %v938_v2 = vmax.f32 %v933_v63, 0.0  ;;  %v996_v3 = vperm.slane %v994_v0, 0 }
 0x287   :  { %v941_v5 = vadd.f32 %v938_v2, %v937_v48  ;;  %1172 = vmatpush.bf16.msrb.mxu1 %v2022_v49 }
 0x288   :  { %v920_v6 = vpop.f32.mrf.mxu2  ;;  %v934_v9 = vpop.f32.mrf.mxu3 }
 0x289   :  { %v921_v8 = vadd.f32 %v920_v6, %v907_v4  ;;  %942 = vadd.xlane.f32.xlu2 %v941_v5  ;;  %v997_v4 = vperm.slane %v994_v0, 1 }
 0x28b   :  { %v935_v10 = vadd.f32 %v934_v9, %v921_v8  ;;  %1173 = vmatpush.bf16.msrb.mxu1 %v2021_v52 }
 0x28d   :  { %v940_v13 = vmax.f32 %v935_v10, 0.0  ;;  %v1008_v10 = vld [vmem:[#allocation10] sm:$0x3] }
 0x28e   :  { %v1011_v16 = vperm.slane %v1008_v10, 1 }
 0x28f   :  { %v944_v15 = vadd.f32 %v940_v13, %v939_v12 }
 0x291   :  { %945 = vadd.xlane.f32.xlu2 %v944_v15  ;;  %v1010_v15 = vperm.slane %v1008_v10, 0 }
 0x2fc   :  { %v943_v11 = vpop.xlane.xlu2 %942 }
 0x2fd   :  { %v954_v19 = vmul.f32 %v953_v28, %v943_v11 }
 0x2ff   :  { %v2647_v18 = vsub.f32 %v937_v48, %v954_v19  ;;  %v2649_v21 = vsub.f32 %v938_v2, %v954_v19 }
 0x301   :  { %v960_v26 = vmul.f32 %v2647_v18, %v2647_v18  ;;  %v961_v31 = vmul.f32 %v2649_v21, %v2649_v21 }
 0x303   :  { %v964_v38 = vadd.f32 %v961_v31, %v960_v26 }
 0x304   :  { %v946_v22 = vpop.xlane.xlu2 %945 }
 0x305   :  { %v955_v32 = vmul.f32 %v953_v28, %v946_v22  ;;  %965 = vadd.xlane.f32.xlu0 %v964_v38 }
 0x307   :  { %v2655_v23 = vsub.f32 %v939_v12, %v955_v32  ;;  %v2657_v33 = vsub.f32 %v940_v13, %v955_v32  ;;  %v2066_v32 = vld [vmem:[%s2752_s10] ss:$0 sm:$0xff] }
 0x309   :  { %v962_v24 = vmul.f32 %v2655_v23, %v2655_v23  ;;  %v963_v36 = vmul.f32 %v2657_v33, %v2657_v33 }
 0x30b   :  { %v967_v37 = vadd.f32 %v963_v36, %v962_v24 }
 0x30d   :  { %968 = vadd.xlane.f32.xlu1 %v967_v37 }
 0x378   :  { %v966_v50 = vpop.xlane.xlu0 %965 }
 0x379   :  { %v970_v53 = vmul.f32 %v966_v50, %v953_v28 }
 0x37b   :  { %v972_v54 = vadd.f32 1e-05, %v970_v53 }
 0x37d   :  { %2082 = vrsqrt.f32 %v972_v54  ;;  %vm980_vm10 = vweird.f32 %v972_v54 }
 0x380   :  { %v969_v55 = vpop.xlane.xlu1 %968 }
 0x381   :  { %v971_v56 = vmul.f32 %v969_v55, %v953_v28  ;;  %v2035_v55 = vld [vmem:[%s2755_s13 + $0x30] sm:$0xff] }
 0x383   :  { %v2083_v57 = vpop.eup %2082  ;;  %v973_v58 = vadd.f32 1e-05, %v971_v56  ;;  %v2034_v56 = vld [vmem:[%s2755_s13 + $0x28] sm:$0xff] }
 0x384   :  { %v975_v59 = vmul.f32 %v2083_v57, %v972_v54  ;;  %vm981_vm9 = vweird.f32 %v2083_v57  ;;  %v2036_v54 = vld [vmem:[%s2755_s13 + $0x38] sm:$0xff] }
 0x385   :  { %2084 = vrsqrt.f32 %v973_v58  ;;  %vm982_vm11 = vmor %vm980_vm10, %vm981_vm9  ;;  %vm990_vm13 = vweird.f32 %v973_v58  ;;  %1310 = vmatpush.bf16.msrb.mxu2 %v2036_v54  ;;  %v2039_v54 = vld [vmem:[%s2759_s17 + $0x10] sm:$0xff] }
 0x386   :  { %v976_v60 = vmul.f32 %v2083_v57, %v975_v59  ;;  %2086 = vrcp.f32 %v2366_v30  ;;  %v2031_v59 = vld [vmem:[%s2755_s13 + $0x10] sm:$0xff] }
 0x388   :  { %v977_v61 = vmul.f32 0.5, %v976_v60  ;;  %v2030_v60 = vld [vmem:[%s2755_s13 + $0x8] sm:$0xff] }
 0x389   :  { %1311 = vmatpush.bf16.msrb.mxu2 %v2035_v55  ;;  %v2038_v55 = vld [vmem:[%s2759_s17 + $0x8] sm:$0xff] }
 0x38a   :  { %v978_v62 = vsub.f32 1.5, %v977_v61 }
 0x38b   :  { %v2085_v63 = vpop.eup %2084 }
 0x38c   :  { %v979_v48 = vmul.f32 %v2083_v57, %v978_v62  ;;  %v985_v1 = vmul.f32 %v2085_v63, %v973_v58  ;;  %vm991_vm12 = vweird.f32 %v2085_v63  ;;  %v2087_v34 = vpop.eup %2086  ;;  %v2032_v58 = vld [vmem:[%s2755_s13 + $0x18] sm:$0xff]  ;;  %v2029_v62 = vld [vmem:[%s2755_s13] sm:$0xff] }
 0x38d   :  { %vm992_vm14 = vmor %vm990_vm13, %vm991_vm12  ;;  %v1187_v35 = vmul.f32 128.0, %v2087_v34  ;;  %vm1191_vm15 = vweird.f32 %v2087_v34  ;;  %1312 = vmatpush.bf16.msrb.mxu2 %v2034_v56 }
 0x38e   :  { %v986_v2 = vmul.f32 %v2085_v63, %v985_v1  ;;  %v983_v5 = vsel %vm982_vm11, %v2083_v57, %v979_v48  ;;  %v2033_v57 = vld [vmem:[%s2755_s13 + $0x20] sm:$0xff] }
 0x38f   :  { %v1000_v8 = vmul.f32 %v996_v3, %v983_v5  ;;  %v1001_v9 = vmul.f32 %v997_v4, %v983_v5  ;;  %v1188_v41 = vsub.f32 1.0, %v1187_v35 }
 0x390   :  { %v987_v6 = vmul.f32 0.5, %v986_v2 }
 0x391   :  { %v1004_v27 = vmul.f32 %v1000_v8, %v2647_v18  ;;  %v1005_v17 = vmul.f32 %v1001_v9, %v2649_v21  ;;  %v1189_v42 = vmul.f32 %v2087_v34, %v1188_v41  ;;  %1313 = vmatpush.bf16.msrb.mxu2 %v2033_v57 }
 0x392   :  { %v988_v7 = vsub.f32 1.5, %v987_v6 }
 0x393   :  { %v1014_v11 = vadd.f32 %v1010_v15, %v1004_v27  ;;  %v1015_v26 = vadd.f32 %v1011_v16, %v1005_v17  ;;  %v1190_v43 = vadd.f32 %v2087_v34, %v1189_v42 }
 0x394   :  { %v989_v12 = vmul.f32 %v2085_v63, %v988_v7 }
 0x395   :  { %v1192_v44 = vsel %vm1191_vm15, %v2087_v34, %v1190_v43  ;;  %1314 = vmatpush.bf16.msrb.mxu2 %v2032_v58  ;;  %v2037_v58 = vld [vmem:[%s2759_s17] sm:$0xff] }
 0x396   :  { %v993_v13 = vsel %vm992_vm14, %v2085_v63, %v989_v12 }
 0x397   :  { %v1002_v14 = vmul.f32 %v996_v3, %v993_v13  ;;  %v1003_v25 = vmul.f32 %v997_v4, %v993_v13  ;;  %v2067_v13 = vld [vmem:[#allocation13] ss:$0 sm:$0xff] }
 0x399   :  { %v1006_v20 = vmul.f32 %v1002_v14, %v2655_v23  ;;  %v1007_v28 = vmul.f32 %v1003_v25, %v2657_v33  ;;  %1315 = vmatpush.bf16.msrb.mxu2 %v2031_v59 }
 0x39b   :  { %v1016_v19 = vadd.f32 %v1010_v15, %v1006_v20  ;;  %v1017_v31 = vadd.f32 %v1011_v16, %v1007_v28 }
 0x39d   :  { %v1018_v38 = vpack.c.bf16 %v1016_v19, %v1014_v11  ;;  %v1019_v22 = vpack.c.bf16 %v1017_v31, %v1015_v26  ;;  %1316 = vmatpush.bf16.msrb.mxu2 %v2030_v60  ;;  %v2068_v11 = vld [vmem:[#allocation15] ss:$0 sm:$0xff]  ;;  %v2044_v60 = vld [vmem:[%s2761_s19 + $0x18] sm:$0xff] }
 0x39f   :  { %1160 = vmatmul.bf16.vlgmr.msrb.gmra.mxu0 %v1018_v38  ;;  %1174 = vmatmul.bf16.vlgmr.msrb.gmra.mxu1 %v1019_v22  ;;  %v2069_v22 = vld [vmem:[%s2756_s14] ss:$0 sm:$0xff] }
 0x3a1   :  { %1317 = vmatpush.bf16.msrb.mxu2 %v2029_v62 }
 0x41c   :  { %v1161_v24 = vpop.f32.mrf.mxu0  ;;  %v1175_v18 = vpop.f32.mrf.mxu1 }
 0x41d   :  { %v1162_v36 = vadd.f32 %v2066_v32, %v1161_v24 }
 0x41f   :  { %v1176_v21 = vadd.f32 %v1175_v18, %v1162_v36 }
 0x421   :  { %v1180_v37 = vmax.f32 %v1176_v21, 0.0 }
 0x423   :  { %1182 = vadd.xlane.f32.xlu2 %v1180_v37 }
 0x424   :  { %v1163_v23 = vpop.f32.mrf.mxu0  ;;  %v1177_v39 = vpop.f32.mrf.mxu1 }
 0x425   :  { %v1164_v33 = vadd.f32 %v2066_v32, %v1163_v23 }
 0x427   :  { %v1178_v40 = vadd.f32 %v1177_v39, %v1164_v33  ;;  %v2367_v39 = vmov 64.0  }
 0x429   :  { %v1181_v29 = vmax.f32 %v1178_v40, 0.0 }
 0x42b   :  { %1184 = vadd.xlane.f32.xlu0 %v1181_v29 }
 0x496   :  { %v1183_v45 = vpop.xlane.xlu2 %1182 }
 0x497   :  { %v1193_v46 = vmul.f32 %v1192_v44, %v1183_v45 }
 0x499   :  { %v1195_v47 = vsub.f32 %v1180_v37, %v1193_v46 }
 0x49b   :  { %v1197_v49 = vmul.f32 %v1195_v47, %v1195_v47 }
 0x49d   :  { %1199 = vadd.xlane.f32.xlu1 %v1197_v49 }
 0x49e   :  { %v1185_v50 = vpop.xlane.xlu0 %1184 }
 0x49f   :  { %v1194_v51 = vmul.f32 %v1192_v44, %v1185_v50 }
 0x4a1   :  { %v1196_v52 = vsub.f32 %v1181_v29, %v1194_v51 }
 0x4a3   :  { %v1198_v53 = vmul.f32 %v1196_v52, %v1196_v52 }
 0x4a5   :  { %1201 = vadd.xlane.f32.xlu2 %v1198_v53  ;;  %v2040_v53 = vld [vmem:[%s2759_s17 + $0x18] sm:$0xff] }
 0x4a6   :  { %1434 = vmatpush.bf16.msrb.mxu3 %v2040_v53 }
 0x4aa   :  { %1435 = vmatpush.bf16.msrb.mxu3 %v2039_v54 }
 0x4ae   :  { %1436 = vmatpush.bf16.msrb.mxu3 %v2038_v55 }
 0x4b2   :  { %1437 = vmatpush.bf16.msrb.mxu3 %v2037_v58 }
 0x4b6   :  { %1490 = vmatpush.bf16.msra.mxu3 %v2044_v60 }
 0x510   :  { %v1200_v61 = vpop.xlane.xlu1 %1199 }
 0x511   :  { %v1203_v63 = vmul.f32 %v1200_v61, %v1192_v44 }
 0x513   :  { %v1205_v0 = vadd.f32 1e-05, %v1203_v63 }
 0x515   :  { %2088 = vrsqrt.f32 %v1205_v0  ;;  %vm1213_vm1 = vweird.f32 %v1205_v0 }
 0x518   :  { %v1202_v48 = vpop.xlane.xlu2 %1201 }
 0x519   :  { %v1204_v1 = vmul.f32 %v1202_v48, %v1192_v44 }
 0x51b   :  { %v2089_v2 = vpop.eup %2088  ;;  %v1206_v3 = vadd.f32 1e-05, %v1204_v1 }
 0x51c   :  { %v1208_v4 = vmul.f32 %v2089_v2, %v1205_v0  ;;  %vm1214_vm0 = vweird.f32 %v2089_v2 }
 0x51d   :  { %2090 = vrsqrt.f32 %v1206_v3  ;;  %vm1215_vm2 = vmor %vm1213_vm1, %vm1214_vm0  ;;  %vm1223_vm4 = vweird.f32 %v1206_v3 }
 0x51e   :  { %v1209_v5 = vmul.f32 %v2089_v2, %v1208_v4  ;;  %2092 = vrcp.f32 %v2367_v39 }
 0x520   :  { %v1210_v6 = vmul.f32 0.5, %v1209_v5 }
 0x522   :  { %v1211_v7 = vsub.f32 1.5, %v1210_v6 }
 0x523   :  { %v2091_v8 = vpop.eup %2090 }
 0x524   :  { %v1212_v9 = vmul.f32 %v2089_v2, %v1211_v7  ;;  %v1218_v10 = vmul.f32 %v2091_v8, %v1206_v3  ;;  %vm1224_vm3 = vweird.f32 %v2091_v8  ;;  %v2093_v40 = vpop.eup %2092 }
 0x525   :  { %vm1225_vm5 = vmor %vm1223_vm4, %vm1224_vm3  ;;  %v1334_v29 = vmul.f32 64.0, %v2093_v40  ;;  %vm1338_vm7 = vweird.f32 %v2093_v40 }
 0x526   :  { %v1219_v12 = vmul.f32 %v2091_v8, %v1218_v10  ;;  %v1216_v15 = vsel %vm1215_vm2, %v2089_v2, %v1212_v9 }
 0x527   :  { %v1231_v25 = vmul.f32 %v2067_v13, %v1216_v15  ;;  %v1335_v30 = vsub.f32 1.0, %v1334_v29 }
 0x528   :  { %v1220_v16 = vmul.f32 0.5, %v1219_v12 }
 0x529   :  { %v1233_v28 = vmul.f32 %v1231_v25, %v1195_v47  ;;  %v1336_v34 = vmul.f32 %v2093_v40, %v1335_v30  ;;  %v2368_v30 = vmov 4  }
 0x52a   :  { %v1221_v14 = vsub.f32 1.5, %v1220_v16  ;;  %2064 = vset.pattern.permute.xlu0 %v2368_v30  ;;  %2065 = vset.pattern.permute.xlu1 %v2368_v30 }
 0x52b   :  { %v1239_v26 = vadd.f32 %v2068_v11, %v1233_v28  ;;  %v1337_v35 = vadd.f32 %v2093_v40, %v1336_v34 }
 0x52c   :  { %v1222_v27 = vmul.f32 %v2091_v8, %v1221_v14  ;;  %v2071_v14 = vld [vmem:[%s2758_s16] ss:$0 sm:$0xff] }
 0x52d   :  { %v1339_v41 = vsel %vm1338_vm7, %v2093_v40, %v1337_v35 }
 0x52e   :  { %v1226_v17 = vsel %vm1225_vm5, %v2091_v8, %v1222_v27  ;;  %v2070_v8 = vld [vmem:[#allocation16] ss:$0 sm:$0xff] }
 0x52f   :  { %v1232_v20 = vmul.f32 %v2067_v13, %v1226_v17 }
 0x531   :  { %v1234_v19 = vmul.f32 %v1232_v20, %v1196_v52 }
 0x533   :  { %v1240_v31 = vadd.f32 %v2068_v11, %v1234_v19  ;;  %v2043_v19 = vld [vmem:[%s2761_s19 + $0x10] sm:$0xff] }
 0x534   :  { %1491 = vmatpush.bf16.msra.mxu3 %v2043_v19 }
 0x535   :  { %v1241_v38 = vpack.c.bf16 %v1240_v31, %v1239_v26  ;;  %v2042_v26 = vld [vmem:[%s2761_s19 + $0x8] sm:$0xff]  ;;  %v2041_v31 = vld [vmem:[%s2761_s19] sm:$0xff] }
 0x537   :  { %1318 = vmatmul.bf16.vlgmr.msrb.gmra.mxu2 %v1241_v38 }
 0x538   :  { %1492 = vmatpush.bf16.msra.mxu3 %v2042_v26 }
 0x53c   :  { %1493 = vmatpush.bf16.msra.mxu3 %v2041_v31 }
 0x5ba   :  { %v1319_v32 = vpop.f32.mrf.mxu2 }
 0x5bb   :  { %v1320_v24 = vadd.f32 %v2069_v22, %v1319_v32 }
 0x5bd   :  { %v1324_v18 = vmax.f32 %v1320_v24, 0.0 }
 0x5bf   :  { %v1327_v36 = vsel %vm1326_vm6, %v1324_v18, 0.0 }
 0x5c0   :  { %1328 = vadd.xlane.f32.xlu0 %v1327_v36 }
 0x5c2   :  { %v1321_v21 = vpop.f32.mrf.mxu2 }
 0x5c3   :  { %v1322_v37 = vadd.f32 %v2069_v22, %v1321_v21  ;;  %v2072_v22 = vld [vmem:[%s2760_s18] ss:$0 sm:$0xff] }
 0x5c5   :  { %v1325_v23 = vmax.f32 %v1322_v37, 0.0 }
 0x5c7   :  { %v1330_v33 = vsel %vm1326_vm6, %v1325_v23, 0.0 }
 0x5c8   :  { %1331 = vadd.xlane.f32.xlu1 %v1330_v33 }
 0x633   :  { %v1329_v42 = vpop.xlane.xlu0 %1328 }
 0x634   :  { %v1340_v43 = vmul.f32 %v1339_v41, %v1329_v42 }
 0x636   :  { %v1342_v44 = vsub.f32 %v1324_v18, %v1340_v43 }
 0x638   :  { %v1344_v45 = vmul.f32 %v1342_v44, %v1342_v44 }
 0x63a   :  { %v1346_v46 = vsel %vm1326_vm6, %v1344_v45, 0.0 }
 0x63b   :  { %v1332_v47 = vpop.xlane.xlu1 %1331  ;;  %1347 = vadd.xlane.f32.xlu2 %v1346_v46 }
 0x63c   :  { %v1341_v49 = vmul.f32 %v1339_v41, %v1332_v47 }
 0x63e   :  { %v1343_v50 = vsub.f32 %v1325_v23, %v1341_v49  ;;  %v2073_v23 = vld [vmem:[%s2762_s20] ss:$0 sm:$0xff] }
 0x640   :  { %v1345_v51 = vmul.f32 %v1343_v50, %v1343_v50 }
 0x642   :  { %v1349_v52 = vsel %vm1326_vm6, %v1345_v51, 0.0 }
 0x643   :  { %1350 = vadd.xlane.f32.xlu0 %v1349_v52 }
 0x6ae   :  { %v1348_v56 = vpop.xlane.xlu2 %1347 }
 0x6af   :  { %v1352_v57 = vmul.f32 %v1348_v56, %v1339_v41 }
 0x6b1   :  { %v1354_v59 = vadd.f32 1e-05, %v1352_v57 }
 0x6b3   :  { %2094 = vrsqrt.f32 %v1354_v59  ;;  %vm1362_vm9 = vweird.f32 %v1354_v59 }
 0x6b6   :  { %v1351_v61 = vpop.xlane.xlu0 %1350 }
 0x6b7   :  { %v1353_v62 = vmul.f32 %v1351_v61, %v1339_v41 }
 0x6b9   :  { %v2095_v63 = vpop.eup %2094  ;;  %v1355_v0 = vadd.f32 1e-05, %v1353_v62 }
 0x6ba   :  { %v1357_v48 = vmul.f32 %v2095_v63, %v1354_v59  ;;  %vm1363_vm8 = vweird.f32 %v2095_v63 }
 0x6bb   :  { %2096 = vrsqrt.f32 %v1355_v0  ;;  %vm1364_vm10 = vmor %vm1362_vm9, %vm1363_vm8  ;;  %vm1372_vm12 = vweird.f32 %v1355_v0 }
 0x6bc   :  { %v1358_v1 = vmul.f32 %v2095_v63, %v1357_v48 }
 0x6be   :  { %v1359_v2 = vmul.f32 0.5, %v1358_v1 }
 0x6c0   :  { %v1360_v3 = vsub.f32 1.5, %v1359_v2 }
 0x6c1   :  { %v2097_v4 = vpop.eup %2096 }
 0x6c2   :  { %v1361_v5 = vmul.f32 %v2095_v63, %v1360_v3  ;;  %v1367_v6 = vmul.f32 %v2097_v4, %v1355_v0  ;;  %vm1373_vm11 = vweird.f32 %v2097_v4 }
 0x6c3   :  { %vm1374_vm13 = vmor %vm1372_vm12, %vm1373_vm11 }
 0x6c4   :  { %v1368_v7 = vmul.f32 %v2097_v4, %v1367_v6  ;;  %v1365_v9 = vsel %vm1364_vm10, %v2095_v63, %v1361_v5 }
 0x6c5   :  { %v1380_v13 = vmul.f32 %v2070_v8, %v1365_v9 }
 0x6c6   :  { %v1369_v10 = vmul.f32 0.5, %v1368_v7 }
 0x6c7   :  { %v1382_v25 = vmul.f32 %v1380_v13, %v1342_v44 }
 0x6c8   :  { %v1370_v12 = vsub.f32 1.5, %v1369_v10 }
 0x6c9   :  { %v1388_v20 = vadd.f32 %v2071_v14, %v1382_v25 }
 0x6ca   :  { %v1371_v15 = vmul.f32 %v2097_v4, %v1370_v12 }
 0x6cc   :  { %v1375_v16 = vsel %vm1374_vm13, %v2097_v4, %v1371_v15 }
 0x6cd   :  { %v1381_v27 = vmul.f32 %v2070_v8, %v1375_v16 }
 0x6cf   :  { %v1383_v17 = vmul.f32 %v1381_v27, %v1343_v50 }
 0x6d1   :  { %v1389_v28 = vadd.f32 %v2071_v14, %v1383_v17 }
 0x6d3   :  { %v1390_v11 = vpack.c.bf16 %v1389_v28, %v1388_v20 }
 0x6d5   :  { %1926 = vmatmul.msk.bf16.vlgmr.msrb.gmra.mxu3 %vm1326_vm6, %v1390_v11 }
 0x758   :  { %v1439_v38 = vpop.f32.mrf.mxu3 }
 0x759   :  { %v1440_v32 = vadd.f32 %v2072_v22, %v1439_v38 }
 0x75b   :  { %v1444_v36 = vmax.f32 %v1440_v32, 0.0 }
 0x760   :  { %v1441_v24 = vpop.f32.mrf.mxu3 }
 0x761   :  { %v1442_v18 = vadd.f32 %v2072_v22, %v1441_v24 }
 0x763   :  { %v1445_v21 = vmax.f32 %v1442_v18, 0.0 }
 0x765   :  { %v1446_v37 = vpack.c.bf16 %v1445_v21, %v1444_v36 }
 0x767   :  { %1943 = vmatmul.msk.bf16.vlgmr.msra.gmra.mxu3 %vm1326_vm6, %v1446_v37 }
 0x7ea   :  { %v1495_v33 = vpop.f32.mrf.mxu3 }
 0x7eb   :  { %v1496_v39 = vadd.f32 %v2073_v23, %v1495_v33 }
 0x7ed   :  { %1500 = vadd.xlane.f32.xlu1 %v1496_v39 }
 0x7f2   :  { %v1497_v40 = vpop.f32.mrf.mxu3 }
 0x7f3   :  { %v1498_v29 = vadd.f32 %v2073_v23, %v1497_v40 }
 0x7f5   :  { %1502 = vadd.xlane.f32.xlu2 %v1498_v29 }
 0x860   :  { %v1501_v34 = vpop.xlane.xlu1 %1500 }
 0x861   :  { %v1504_v35 = vsub.f32 %v1501_v34, %v1496_v39 }
 0x863   :  { %v1506_v41 = vmul.f32 0.25, %v1504_v35 }
 0x865   :  { %v1508_v42 = vsub.f32 %v1496_v39, %v1506_v41 }
 0x867   :  { %1512 = vperm.xlu0 %2064, %v1508_v42  }
 0x868   :  { %v1503_v43 = vpop.xlane.xlu2 %1502 }
 0x869   :  { %v1505_v44 = vsub.f32 %v1503_v43, %v1498_v29 }
 0x86b   :  { %v1507_v45 = vmul.f32 0.25, %v1505_v44 }
 0x86d   :  { %v1509_v46 = vsub.f32 %v1498_v29, %v1507_v45 }
 0x86f   :  { %1517 = vperm.xlu1 %2065, %v1509_v46  }
 0x8d9   :  { %v1513_v47 = vpop.permute.xlu0 %1512 }
 0x8da   :  { %v1520_v49 = vadd.f32 %v1513_v47, %v1496_v39 }
 0x8dc   :  { %1522 = vst [vmem:[%s2763_s21] sm:$0xff] %v1520_v49 }
 0x8e1   :  { %v1518_v50 = vpop.permute.xlu1 %1517 }
 0x8e2   :  { %v1521_v51 = vadd.f32 %v1518_v50, %v1498_v29 }
 0x8e4   :  { %1523 = vst [vmem:[%s2763_s21 + $0x8] sm:$0xff] %v1521_v51 }
 0x8e5   :  { %1528 = vsyncpa [#allocation3], 1 }
 0x8e6   :  { %1529 = vsyncpa [#allocation5], 1 }
 0x8e7   :  { %1530 = vsyncpa [#allocation8], 1 }
 0x8e8   :  { %1531 = vsyncpa [#allocation11], 1 }
 0x8e9   :  { %1532 = vsyncpa [#allocation14], 1 }
 0x8ea   :  { %1533 = vsyncpa [#allocation17], 1 }

</bundles_post_ra>
